<compile_context>
chip_gen: v7x
topology: tpu7x:2x2x1
jax: 0.10.0
libtpu: 0.0.40
codegen_flags: <defaults>
</compile_context>

<pallas_src>
import jax
import jax.numpy as jnp
from jax.experimental import pallas as pl
from jax.experimental.pallas import tpu as pltpu

Z_DIM = 2
HIDDEN_DIM = 256
OUT_DIM = 2
NEG_SLOPE = 0.2


def _leaky_relu(x, slope=NEG_SLOPE):
    return jnp.where(x > 0, x, slope * x)


def _round_up(x, m):
    return (x + m - 1) // m * m


def _chip_config():
    """Return (tile_cap, vmem_limit_bytes or None, min_grid_steps) per TPU gen."""
    try:
        kind = jax.devices()[0].device_kind.lower()
    except Exception:
        kind = ""
    if "v7" in kind:
        # 2 TensorCores / 64 MiB VMEM: modest tiles, even grid for 2-TC sharding.
        return 2048, 48 * 1024 * 1024, 2
    if "v5" in kind or "v6" in kind:
        # 1 TensorCore / 128 MiB VMEM: large tiles amortize per-step overhead.
        return 4096, 96 * 1024 * 1024, 1
    # Unknown generation: stay within the default scoped-VMEM limit.
    return 1024, None, 1


def generator_kernel(z_ref, w1_ref, b1_ref, w2_ref, b2_ref, w3t_ref, b3_ref, o_ref):
    """Fused 3-layer MLP over one batch tile."""
    z = z_ref[...]                                            # (tb, 2)  f32

    # ---- Layer 1 (in=2): VPU broadcast mul-adds.  A K=2 contraction would pay
    # a full MXU pass padded to K>=128; keep the MXU free for the 256x256 layer.
    h1 = (z[:, 0:1] * w1_ref[0:1, :]
          + z[:, 1:2] * w1_ref[1:2, :]
          + b1_ref[...])                                      # (tb, 256) f32
    h1 = _leaky_relu(h1)

    # ---- Layer 2 (256x256): bf16 operands on the MXU, f32 accumulation.
    h2 = jnp.dot(h1.astype(jnp.bfloat16), w2_ref[...],
                 preferred_element_type=jnp.float32) + b2_ref[...]
    h2 = _leaky_relu(h2)                                      # (tb, 256) f32

    # ---- Layer 3 (256 -> 2): only two useful output columns, so skip the MXU
    # entirely: VPU multiplies + XLU cross-lane reductions, all in f32.
    o0 = jnp.sum(h2 * w3t_ref[0:1, :], axis=-1, keepdims=True)   # (tb, 1)
    o1 = jnp.sum(h2 * w3t_ref[1:2, :], axis=-1, keepdims=True)   # (tb, 1)
    b3 = b3_ref[...]                                             # (1, 2)
    o_ref[:, 0:1] = (o0 + b3[:, 0:1]).astype(o_ref.dtype)
    o_ref[:, 1:2] = (o1 + b3[:, 1:2]).astype(o_ref.dtype)


def prepare_params(params):
    """One-time parameter packing for the kernel (hoisted out of the forward)."""
    return {
        "w1": params["w1"].astype(jnp.float32),                         # (2, 256)
        "b1": params["b1"].reshape(1, HIDDEN_DIM).astype(jnp.float32),  # (1, 256)
        "w2": params["w2"].astype(jnp.bfloat16),                        # (256, 256)
        "b2": params["b2"].reshape(1, HIDDEN_DIM).astype(jnp.float32),  # (1, 256)
        "w3t": jnp.transpose(params["w3"]).astype(jnp.float32),         # (2, 256)
        "b3": params["b3"].reshape(1, OUT_DIM).astype(jnp.float32),     # (1, 2)
    }


def generator_forward(z, prepped, *, tb=None):
    """z: (B, Z_DIM) float32.  prepped: output of prepare_params()."""
    B = z.shape[0]
    tile_cap, vmem_limit, min_steps = _chip_config()
    if tb is not None:
        tile_cap = tb

    if min_steps > 1:
        # Multi-TC chip (v7x): force an even number of grid steps so both
        # TensorCores get equal work under dimension_semantics=("parallel",).
        steps = _round_up(max(min_steps, pl.cdiv(B, tile_cap)), min_steps)
        tb_eff = max(8, _round_up(pl.cdiv(B, steps), 8))
    else:
        # Single-TC chip: one grid step whenever the batch fits a tile.
        tb_eff = max(8, min(_round_up(B, 8), tile_cap))

    B_pad = _round_up(B, tb_eff)
    zp = jnp.pad(z, ((0, B_pad - B), (0, 0))) if B_pad != B else z
    grid = (B_pad // tb_eff,)

    in_specs = [
        pl.BlockSpec((tb_eff, Z_DIM), lambda i: (i, 0)),              # z tile
        # Parameters: grid-invariant blocks -> resident in VMEM across steps.
        pl.BlockSpec((Z_DIM, HIDDEN_DIM), lambda i: (0, 0)),          # w1
        pl.BlockSpec((1, HIDDEN_DIM), lambda i: (0, 0)),              # b1
        pl.BlockSpec((HIDDEN_DIM, HIDDEN_DIM), lambda i: (0, 0)),     # w2 (bf16)
        pl.BlockSpec((1, HIDDEN_DIM), lambda i: (0, 0)),              # b2
        pl.BlockSpec((Z_DIM, HIDDEN_DIM), lambda i: (0, 0)),          # w3^T
        pl.BlockSpec((1, OUT_DIM), lambda i: (0, 0)),                 # b3
    ]
    out_specs = pl.BlockSpec((tb_eff, OUT_DIM), lambda i: (i, 0))

    flops = 2 * B_pad * (Z_DIM * HIDDEN_DIM
                         + HIDDEN_DIM * HIDDEN_DIM
                         + HIDDEN_DIM * OUT_DIM)
    bytes_accessed = (B_pad * Z_DIM * 4                               # z
                      + Z_DIM * HIDDEN_DIM * 4 + HIDDEN_DIM * 4       # w1, b1
                      + HIDDEN_DIM * HIDDEN_DIM * 2 + HIDDEN_DIM * 4  # w2, b2
                      + Z_DIM * HIDDEN_DIM * 4 + OUT_DIM * 4          # w3, b3
                      + B_pad * OUT_DIM * 4)                          # out

    cp_kwargs = {"dimension_semantics": ("parallel",)}
    if vmem_limit is not None:
        cp_kwargs["vmem_limit_bytes"] = vmem_limit

    out = pl.pallas_call(
        generator_kernel,
        out_shape=jax.ShapeDtypeStruct((B_pad, OUT_DIM), jnp.float32),
        grid=grid,
        in_specs=in_specs,
        out_specs=out_specs,
        compiler_params=pltpu.CompilerParams(**cp_kwargs),
        cost_estimate=pl.CostEstimate(flops=flops, transcendentals=0,
                                      bytes_accessed=bytes_accessed),
    )(zp, prepped["w1"], prepped["b1"], prepped["w2"], prepped["b2"],
      prepped["w3t"], prepped["b3"])

    # Only a cheap row slice (2 columns) when the batch needed padding.
    return out if B_pad == B else out[:B]


def init_params(key):
    """PyTorch nn.Linear default init (U[-1/sqrt(fan_in), +1/sqrt(fan_in)]).
    Weights stored transposed relative to PyTorch: (in_features, out_features)."""
    ks = jax.random.split(key, 6)

    def linear(kw, kb, fan_in, fan_out):
        bound = 1.0 / (fan_in ** 0.5)
        w = jax.random.uniform(kw, (fan_in, fan_out), jnp.float32, -bound, bound)
        b = jax.random.uniform(kb, (1, fan_out), jnp.float32, -bound, bound)
        return w, b

    w1, b1 = linear(ks[0], ks[1], Z_DIM, HIDDEN_DIM)
    w2, b2 = linear(ks[2], ks[3], HIDDEN_DIM, HIDDEN_DIM)
    w3, b3 = linear(ks[4], ks[5], HIDDEN_DIM, OUT_DIM)
    return {"w1": w1, "b1": b1, "w2": w2, "b2": b2, "w3": w3, "b3": b3}


def reference_forward_kernel_math(z, p):
    """Pure-JAX reference mirroring the kernel's arithmetic (bf16 layer-2 MXU)."""
    h1 = _leaky_relu(z @ p["w1"] + p["b1"])
    h2 = _leaky_relu(jnp.dot(h1.astype(jnp.bfloat16), p["w2"].astype(jnp.bfloat16),
                             preferred_element_type=jnp.float32) + p["b2"])
    return h2 @ p["w3"] + p["b3"]


def reference_forward_f32(z, p):
    """Full-f32 reference (exact PyTorch semantics)."""
    h1 = _leaky_relu(z @ p["w1"] + p["b1"])
    h2 = _leaky_relu(h1 @ p["w2"] + p["b2"])
    return h2 @ p["w3"] + p["b3"]


if __name__ == "__main__":
    key = jax.random.PRNGKey(0)
    pkey, zkey = jax.random.split(key)

    params = init_params(pkey)
    prepped = prepare_params(params)           # one-time packing, outside forward

    B = 256                                    # small demo batch
    z = jax.random.normal(zkey, (B, Z_DIM), dtype=jnp.float32)

    out = generator_forward(z, prepped)
    out = jax.block_until_ready(out)
    assert out.shape == (B, OUT_DIM), out.shape

    # Tight check against a reference mirroring the kernel's bf16/f32 math.
    ref_bf16 = reference_forward_kernel_math(z, params)
    assert jnp.allclose(out, ref_bf16, atol=2e-3, rtol=2e-3), "mismatch vs bf16-math reference"

    # Loose check against exact f32 PyTorch semantics (bf16 layer-2 rounding only).
    ref_f32 = reference_forward_f32(z, params)
    assert jnp.allclose(out, ref_f32, atol=5e-2, rtol=5e-2), "mismatch vs f32 reference"

    print("KERNEL_OK")
</pallas_src>

<mosaic_0001>
module attributes {stable_mosaic.version = 11 : i64} {
  func.func @generator_kernel(%arg0: i32, %arg1: memref<256x2xf32, #tpu.memory_space<vmem>>, %arg2: memref<2x256xf32, #tpu.memory_space<vmem>>, %arg3: memref<1x256xf32, #tpu.memory_space<vmem>>, %arg4: memref<256x256xbf16, #tpu.memory_space<vmem>>, %arg5: memref<1x256xf32, #tpu.memory_space<vmem>>, %arg6: memref<2x256xf32, #tpu.memory_space<vmem>>, %arg7: memref<1x2xf32, #tpu.memory_space<vmem>>, %arg8: memref<256x2xf32, #tpu.memory_space<vmem>>) attributes {dimension_semantics = [#tpu.dimension_semantics<parallel>], iteration_bounds = array<i64: 1>, scalar_prefetch = 0 : i64, scratch_operands = 0 : i64, tpu.core_type = #tpu.core_type<tc>, window_params = [{transform_indices = @transform_0, window_bounds = array<i64: 256, 2>}, {pipeline_mode = #tpu.pipeline_mode<synchronous>, transform_indices = @transform_1, window_bounds = array<i64: 2, 256>}, {pipeline_mode = #tpu.pipeline_mode<synchronous>, transform_indices = @transform_2, window_bounds = array<i64: 1, 256>}, {pipeline_mode = #tpu.pipeline_mode<synchronous>, transform_indices = @transform_3, window_bounds = array<i64: 256, 256>}, {pipeline_mode = #tpu.pipeline_mode<synchronous>, transform_indices = @transform_4, window_bounds = array<i64: 1, 256>}, {pipeline_mode = #tpu.pipeline_mode<synchronous>, transform_indices = @transform_5, window_bounds = array<i64: 2, 256>}, {pipeline_mode = #tpu.pipeline_mode<synchronous>, transform_indices = @transform_6, window_bounds = array<i64: 1, 2>}, {transform_indices = @transform_7, window_bounds = array<i64: 256, 2>}]} {
    %c0 = arith.constant 0 : index
    %c0_0 = arith.constant 0 : index
    %0 = vector.load %arg1[%c0, %c0_0] : memref<256x2xf32, #tpu.memory_space<vmem>>, vector<256x2xf32>
    %1 = vector.extract_strided_slice %0 {offsets = [0, 0], sizes = [256, 1], strides = [1, 1]} : vector<256x2xf32> to vector<256x1xf32>
    %c0_1 = arith.constant 0 : index
    %c0_2 = arith.constant 0 : index
    %2 = vector.load %arg2[%c0_1, %c0_2] : memref<2x256xf32, #tpu.memory_space<vmem>>, vector<1x256xf32>
    %3 = vector.broadcast %1 : vector<256x1xf32> to vector<256x256xf32>
    %4 = vector.broadcast %2 : vector<1x256xf32> to vector<256x256xf32>
    %5 = arith.mulf %3, %4 : vector<256x256xf32>
    %6 = vector.extract_strided_slice %0 {offsets = [0, 1], sizes = [256, 1], strides = [1, 1]} : vector<256x2xf32> to vector<256x1xf32>
    %c1 = arith.constant 1 : index
    %c0_3 = arith.constant 0 : index
    %7 = vector.load %arg2[%c1, %c0_3] : memref<2x256xf32, #tpu.memory_space<vmem>>, vector<1x256xf32>
    %8 = vector.broadcast %6 : vector<256x1xf32> to vector<256x256xf32>
    %9 = vector.broadcast %7 : vector<1x256xf32> to vector<256x256xf32>
    %10 = arith.mulf %8, %9 : vector<256x256xf32>
    %11 = arith.addf %5, %10 : vector<256x256xf32>
    %c0_4 = arith.constant 0 : index
    %c0_5 = arith.constant 0 : index
    %12 = vector.load %arg3[%c0_4, %c0_5] : memref<1x256xf32, #tpu.memory_space<vmem>>, vector<1x256xf32>
    %13 = vector.broadcast %12 : vector<1x256xf32> to vector<256x256xf32>
    %14 = arith.addf %11, %13 : vector<256x256xf32>
    %cst = arith.constant 0.000000e+00 : f32
    %15 = vector.broadcast %cst : f32 to vector<256x256xf32>
    %16 = arith.cmpf ogt, %14, %15 : vector<256x256xf32>
    %cst_6 = arith.constant 2.000000e-01 : f32
    %17 = vector.broadcast %cst_6 : f32 to vector<256x256xf32>
    %18 = arith.mulf %17, %14 : vector<256x256xf32>
    %19 = arith.select %16, %14, %18 : vector<256x256xi1>, vector<256x256xf32>
    %20 = arith.truncf %19 : vector<256x256xf32> to vector<256x256xbf16>
    %c0_7 = arith.constant 0 : index
    %c0_8 = arith.constant 0 : index
    %21 = vector.load %arg4[%c0_7, %c0_8] : memref<256x256xbf16, #tpu.memory_space<vmem>>, vector<256x256xbf16>
    %cst_9 = arith.constant dense<0.000000e+00> : vector<256x256xf32>
    %22 = tpu.matmul %20, %21, %cst_9 {dimension_numbers = #tpu.dot_dimension_numbers<[1], [0], [0], [1], [0, 0, 1, 1], [], []>} : vector<256x256xbf16>, vector<256x256xbf16>, vector<256x256xf32> -> vector<256x256xf32>
    %c0_10 = arith.constant 0 : index
    %c0_11 = arith.constant 0 : index
    %23 = vector.load %arg5[%c0_10, %c0_11] : memref<1x256xf32, #tpu.memory_space<vmem>>, vector<1x256xf32>
    %24 = vector.broadcast %23 : vector<1x256xf32> to vector<256x256xf32>
    %25 = arith.addf %22, %24 : vector<256x256xf32>
    %cst_12 = arith.constant 0.000000e+00 : f32
    %26 = vector.broadcast %cst_12 : f32 to vector<256x256xf32>
    %27 = arith.cmpf ogt, %25, %26 : vector<256x256xf32>
    %cst_13 = arith.constant 2.000000e-01 : f32
    %28 = vector.broadcast %cst_13 : f32 to vector<256x256xf32>
    %29 = arith.mulf %28, %25 : vector<256x256xf32>
    %30 = arith.select %27, %25, %29 : vector<256x256xi1>, vector<256x256xf32>
    %c0_14 = arith.constant 0 : index
    %c0_15 = arith.constant 0 : index
    %31 = vector.load %arg6[%c0_14, %c0_15] : memref<2x256xf32, #tpu.memory_space<vmem>>, vector<1x256xf32>
    %32 = vector.broadcast %31 : vector<1x256xf32> to vector<256x256xf32>
    %33 = arith.mulf %30, %32 : vector<256x256xf32>
    %cst_16 = arith.constant dense<0.000000e+00> : vector<256xf32>
    %34 = vector.multi_reduction <add>, %33, %cst_16 [1] : vector<256x256xf32> to vector<256xf32>
    %35 = vector.shape_cast %34 : vector<256xf32> to vector<256x1xf32>
    %c1_17 = arith.constant 1 : index
    %c0_18 = arith.constant 0 : index
    %36 = vector.load %arg6[%c1_17, %c0_18] : memref<2x256xf32, #tpu.memory_space<vmem>>, vector<1x256xf32>
    %37 = vector.broadcast %36 : vector<1x256xf32> to vector<256x256xf32>
    %38 = arith.mulf %30, %37 : vector<256x256xf32>
    %cst_19 = arith.constant dense<0.000000e+00> : vector<256xf32>
    %39 = vector.multi_reduction <add>, %38, %cst_19 [1] : vector<256x256xf32> to vector<256xf32>
    %40 = vector.shape_cast %39 : vector<256xf32> to vector<256x1xf32>
    %c0_20 = arith.constant 0 : index
    %c0_21 = arith.constant 0 : index
    %41 = vector.load %arg7[%c0_20, %c0_21] : memref<1x2xf32, #tpu.memory_space<vmem>>, vector<1x2xf32>
    %42 = vector.extract_strided_slice %41 {offsets = [0, 0], sizes = [1, 1], strides = [1, 1]} : vector<1x2xf32> to vector<1x1xf32>
    %43 = vector.broadcast %42 : vector<1x1xf32> to vector<256x1xf32>
    %44 = arith.addf %35, %43 : vector<256x1xf32>
    %c0_22 = arith.constant 0 : index
    %c0_23 = arith.constant 0 : index
    %45 = vector.load %arg8[%c0_22, %c0_23] : memref<256x2xf32, #tpu.memory_space<vmem>>, vector<256x1xf32>
    tpu.vector_store %arg8[%c0_22, %c0_23], %44 {strides = array<i32>} : memref<256x2xf32, #tpu.memory_space<vmem>>, vector<256x1xf32>,
    %46 = vector.extract_strided_slice %41 {offsets = [0, 1], sizes = [1, 1], strides = [1, 1]} : vector<1x2xf32> to vector<1x1xf32>
    %47 = vector.broadcast %46 : vector<1x1xf32> to vector<256x1xf32>
    %48 = arith.addf %40, %47 : vector<256x1xf32>
    %c0_24 = arith.constant 0 : index
    %c1_25 = arith.constant 1 : index
    %49 = vector.load %arg8[%c0_24, %c1_25] : memref<256x2xf32, #tpu.memory_space<vmem>>, vector<256x1xf32>
    tpu.vector_store %arg8[%c0_24, %c1_25], %48 {strides = array<i32>} : memref<256x2xf32, #tpu.memory_space<vmem>>, vector<256x1xf32>,
    return
  }
  func.func @transform_0(%arg0: i32) -> (i32, i32) {
    %c0_i32 = arith.constant 0 : i32
    %c0_i32_0 = arith.constant 0 : i32
    return %arg0, %c0_i32 : i32, i32
  }
  func.func @transform_1(%arg0: i32) -> (i32, i32) {
    %c0_i32 = arith.constant 0 : i32
    %c0_i32_0 = arith.constant 0 : i32
    %c0_i32_1 = arith.constant 0 : i32
    return %c0_i32, %c0_i32_0 : i32, i32
  }
  func.func @transform_2(%arg0: i32) -> (i32, i32) {
    %c0_i32 = arith.constant 0 : i32
    %c0_i32_0 = arith.constant 0 : i32
    %c0_i32_1 = arith.constant 0 : i32
    return %c0_i32, %c0_i32_0 : i32, i32
  }
  func.func @transform_3(%arg0: i32) -> (i32, i32) {
    %c0_i32 = arith.constant 0 : i32
    %c0_i32_0 = arith.constant 0 : i32
    %c0_i32_1 = arith.constant 0 : i32
    return %c0_i32, %c0_i32_0 : i32, i32
  }
  func.func @transform_4(%arg0: i32) -> (i32, i32) {
    %c0_i32 = arith.constant 0 : i32
    %c0_i32_0 = arith.constant 0 : i32
    %c0_i32_1 = arith.constant 0 : i32
    return %c0_i32, %c0_i32_0 : i32, i32
  }
  func.func @transform_5(%arg0: i32) -> (i32, i32) {
    %c0_i32 = arith.constant 0 : i32
    %c0_i32_0 = arith.constant 0 : i32
    %c0_i32_1 = arith.constant 0 : i32
    return %c0_i32, %c0_i32_0 : i32, i32
  }
  func.func @transform_6(%arg0: i32) -> (i32, i32) {
    %c0_i32 = arith.constant 0 : i32
    %c0_i32_0 = arith.constant 0 : i32
    %c0_i32_1 = arith.constant 0 : i32
    return %c0_i32, %c0_i32_0 : i32, i32
  }
  func.func @transform_7(%arg0: i32) -> (i32, i32) {
    %c0_i32 = arith.constant 0 : i32
    %c0_i32_0 = arith.constant 0 : i32
    return %arg0, %c0_i32 : i32, i32
  }
}

</mosaic_0001>

<bundles_post_ra>
// kernel: tpu_custom_call.1
= control target key start
LH: loop header
LB: loop body
LE: loop exit
PB: predicated region body
PF: predicated region fallthrough
CT: control target
= control target key end

     0   :  { %v2073_v0 = vmov 0   ;;  %v2074_v6 = vmov 1   ;;  %s3292_s0 = inlined_call_operand.vmem [shape: f32[256,2], index: 0, kind: input, shape index: {}]   ;;  %s3293_s3 = inlined_call_operand.vmem [shape: bf16[256,256], index: 3, kind: input, shape index: {}]   ;;  %s3294_s1 = inlined_call_operand.vmem [shape: f32[2,256], index: 1, kind: input, shape index: {}]   ;;  %s3295_s2 = inlined_call_operand.vmem [shape: f32[1,256], index: 2, kind: input, shape index: {}]   ;;  %s3296_s4 = inlined_call_operand.vmem [shape: f32[1,256], index: 4, kind: input, shape index: {}]   ;;  %s3297_s5 = inlined_call_operand.vmem [shape: f32[2,256], index: 5, kind: input, shape index: {}]   ;;  %s3298_s6 = inlined_call_operand.vmem [shape: f32[1,2], index: 6, kind: input, shape index: {}]   ;;  %s3299_s7 = inlined_call_operand.vmem [shape: f32[256,2], index: 7, kind: output, shape index: {}]  }
   0x1   :  { %2008 = vset.pattern.permute.xlu1 %v2073_v0  ;;  %2007 = vset.pattern.permute.xlu0 %v2073_v0  ;;  %v42_v1 = vld [vmem:[%s3292_s0 + $0x80] sm:$0xff]  ;;  %v2129_v3 = vld [vmem:[%s3292_s0 + $0x88] sm:$0xff]  ;;  %v29_v5 = vld [vmem:[%s3292_s0 + $0x18] sm:$0xff] }
   0x2   :  { %v2123_v2 = vld [vmem:[%s3292_s0] sm:$0xff]  ;;  %141 = vperm.xlu1 %2008, %v42_v1   ;;  %v27_v4 = vld [vmem:[%s3292_s0 + $0x8] sm:$0xff]  ;;  %v2028_v10 = vld [vmem:[%s3293_s3 + $0x14] ss:$8 sps:$4 sm:$0xff]  }
   0x3   :  { %61 = vperm.xlu0 %2007, %v2123_v2   ;;  %v2142_v7 = vld [vmem:[%s3292_s0 + $0x28] sm:$0xff]  ;;  %v2157_v11 = vld [vmem:[%s3292_s0 + $0x38] sm:$0xff]  ;;  %v2168_v14 = vld [vmem:[%s3292_s0 + $0x10] sm:$0xff] }
   0x4   :  { %v2025_v8 = vld [vmem:[%s3293_s3 + $0x4] ss:$8 sps:$4 sm:$0xff]   ;;  %v2027_v9 = vld [vmem:[%s3293_s3] ss:$8 sps:$4 sm:$0xff]   ;;  %v2030_v12 = vld [vmem:[%s3293_s3 + $0x10] ss:$8 sps:$4 sm:$0xff]  }
   0x5   :  { %1067 = vmatprep.subr.bf16.mxu0 %v2025_v8  ;;  %1973 = vmatprep.subr.bf16.mxu1 %v2025_v8  ;;  %v2031_v13 = vld [vmem:[%s3293_s3 + $0x24] ss:$8 sps:$4 sm:$0xff]   ;;  %v2033_v15 = vld [vmem:[%s3293_s3 + $0x20] ss:$8 sps:$4 sm:$0xff]   ;;  %v2034_v17 = vld [vmem:[%s3293_s3 + $0x34] ss:$8 sps:$4 sm:$0xff]  }
   0x6   :  { %146 = vperm.xlu1 %2008, %v2129_v3   ;;  %1068 = vmatpush1.bf16.msra.mxu0 %v2027_v9  ;;  %v2178_v16 = vld [vmem:[%s3292_s0 + $0x48] sm:$0xff]  ;;  %v44_v18 = vld [vmem:[%s3292_s0 + $0x90] sm:$0xff]  ;;  %v2191_v19 = vld [vmem:[%s3292_s0 + $0x58] sm:$0xff] }
   0x7   :  { %66 = vperm.xlu0 %2007, %v27_v4   ;;  %1069 = vmatprep.subr.bf16.mxu0 %v2028_v10  ;;  %v2036_v20 = vld [vmem:[%s3293_s3 + $0x30] ss:$8 sps:$4 sm:$0xff]   ;;  %v2037_v21 = vld [vmem:[%s3293_s3 + $0x44] ss:$8 sps:$4 sm:$0xff]   ;;  %v2039_v24 = vld [vmem:[%s3293_s3 + $0x40] ss:$8 sps:$4 sm:$0xff]  }
   0x8   :  { %1989 = vmatpush1.bf16.msra.mxu1 %v2027_v9  ;;  %v45_v22 = vld [vmem:[%s3292_s0 + $0x98] sm:$0xff]  ;;  %v2206_v23 = vld [vmem:[%s3292_s0 + $0x68] sm:$0xff]  ;;  %v30_v32 = vld [vmem:[%s3292_s0 + $0x20] sm:$0xff] }
   0x9   :  { %1974 = vmatprep.subr.bf16.mxu1 %v2028_v10  ;;  %v2040_v25 = vld [vmem:[%s3293_s3 + $0x54] ss:$8 sps:$4 sm:$0xff]   ;;  %v2042_v26 = vld [vmem:[%s3293_s3 + $0x50] ss:$8 sps:$4 sm:$0xff]   ;;  %v2043_v28 = vld [vmem:[%s3293_s3 + $0x64] ss:$8 sps:$4 sm:$0xff]  }
   0xa   :  { %2009 = vset.pattern.permute.xlu1 %v2074_v6  ;;  %1070 = vmatpush1.bf16.msra.mxu0 %v2030_v12  ;;  %v2221_v27 = vld [vmem:[%s3292_s0 + $0x78] sm:$0xff]  ;;  %v2045_v29 = vld [vmem:[%s3293_s3 + $0x60] ss:$8 sps:$4 sm:$0xff]   ;;  %v2049_v33 = vld [vmem:[%s3293_s3 + $0x84] ss:$8 sps:$4 sm:$0xff]  }
   0xb   :  { %76 = vperm.xlu0 %2007, %v29_v5   ;;  %301 = vperm.xlu1 %2009, %v27_v4   ;;  %v2046_v30 = vld [vmem:[%s3293_s3 + $0x74] ss:$8 sps:$4 sm:$0xff]   ;;  %v2048_v31 = vld [vmem:[%s3293_s3 + $0x70] ss:$8 sps:$4 sm:$0xff]   ;;  %v2051_v34 = vld [vmem:[%s3293_s3 + $0x80] ss:$8 sps:$4 sm:$0xff]  }
   0xc   :  { %1071 = vmatprep.subr.bf16.mxu0 %v2031_v13  ;;  %1990 = vmatpush1.bf16.msra.mxu1 %v2030_v12  ;;  %v46_v35 = vld [vmem:[%s3292_s0 + $0xa0] sm:$0xff]  ;;  %v2052_v36 = vld [vmem:[%s3293_s3 + $0x94] ss:$8 sps:$4 sm:$0xff]   ;;  %v2054_v37 = vld [vmem:[%s3293_s3 + $0x90] ss:$8 sps:$4 sm:$0xff]  }
   0xd   :  { %1975 = vmatprep.subr.bf16.mxu1 %v2031_v13  ;;  %v47_v38 = vld [vmem:[%s3292_s0 + $0xa8] sm:$0xff]  ;;  %v2058_v41 = vld [vmem:[%s3293_s3 + $0xb4] ss:$8 sps:$4 sm:$0xff]   ;;  %v2060_v42 = vld [vmem:[%s3293_s3 + $0xb0] ss:$8 sps:$4 sm:$0xff]  }
   0xe   :  { %1072 = vmatpush1.bf16.msra.mxu0 %v2033_v15  ;;  %v2055_v39 = vld [vmem:[%s3293_s3 + $0xa4] ss:$8 sps:$4 sm:$0xff]   ;;  %v2057_v40 = vld [vmem:[%s3293_s3 + $0xa0] ss:$8 sps:$4 sm:$0xff]   ;;  %v32_v45 = vld [vmem:[%s3292_s0 + $0x30] sm:$0xff] }
   0xf   :  { %86 = vperm.xlu0 %2007, %v2142_v7   ;;  %361 = vperm.xlu1 %2009, %v42_v1   ;;  %v2061_v43 = vld [vmem:[%s3293_s3 + $0xc4] ss:$8 sps:$4 sm:$0xff]   ;;  %v2063_v44 = vld [vmem:[%s3293_s3 + $0xc0] ss:$8 sps:$4 sm:$0xff]   ;;  %v2064_v46 = vld [vmem:[%s3293_s3 + $0xd4] ss:$8 sps:$4 sm:$0xff]  }
  0x10   :  { %1073 = vmatprep.subr.bf16.mxu0 %v2034_v17  ;;  %1991 = vmatpush1.bf16.msra.mxu1 %v2033_v15  ;;  %v2066_v47 = vld [vmem:[%s3293_s3 + $0xd0] ss:$8 sps:$4 sm:$0xff]   ;;  %v2067_v48 = vld [vmem:[%s3293_s3 + $0xe4] ss:$8 sps:$4 sm:$0xff]   ;;  %v2069_v51 = vld [vmem:[%s3293_s3 + $0xe0] ss:$8 sps:$4 sm:$0xff]  }
  0x11   :  { %1976 = vmatprep.subr.bf16.mxu1 %v2034_v17  ;;  %v49_v49 = vld [vmem:[%s3292_s0 + $0xb8] sm:$0xff]  ;;  %v48_v50 = vld [vmem:[%s3292_s0 + $0xb0] sm:$0xff]  ;;  %v34_v53 = vld [vmem:[%s3292_s0 + $0x40] sm:$0xff] }
  0x12   :  { %1074 = vmatpush1.bf16.msra.mxu0 %v2036_v20  ;;  %v2070_v52 = vld [vmem:[%s3293_s3 + $0xf4] ss:$8 sps:$4 sm:$0xff]   ;;  %v2072_v54 = vld [vmem:[%s3293_s3 + $0xf0] ss:$8 sps:$4 sm:$0xff]   ;;  %v51_v55 = vld [vmem:[%s3292_s0 + $0xc8] sm:$0xff] }
  0x13   :  { %96 = vperm.xlu0 %2007, %v2157_v11   ;;  %2010 = vset.pattern.permute.xlu1 %v2073_v0  ;;  %v36_v56 = vld [vmem:[%s3292_s0 + $0x50] sm:$0xff]  ;;  %v53_v57 = vld [vmem:[%s3292_s0 + $0xd8] sm:$0xff]  ;;  %v38_v58 = vld [vmem:[%s3292_s0 + $0x60] sm:$0xff] }
  0x14   :  { %71 = vperm.xlu1 %2010, %v2168_v14   ;;  %1075 = vmatprep.subr.bf16.mxu0 %v2037_v21  ;;  %v50_v59 = vld [vmem:[%s3292_s0 + $0xc0] sm:$0xff]  ;;  %v55_v60 = vld [vmem:[%s3292_s0 + $0xe8] sm:$0xff]  ;;  %v40_v61 = vld [vmem:[%s3292_s0 + $0x70] sm:$0xff] }
  0x15   :  { %1992 = vmatpush1.bf16.msra.mxu1 %v2036_v20  ;;  %v2341_v62 = vld [vmem:[%s3292_s0 + $0xf8] sm:$0xff]  ;;  %v52_v63 = vld [vmem:[%s3292_s0 + $0xd0] sm:$0xff]  ;;  %v58_v15 = vld [vmem:[%s3294_s1] ss:$2 sm:$0x3] }
  0x16   :  { %1977 = vmatprep.subr.bf16.mxu1 %v2037_v21  ;;  %1076 = vmatpush1.bf16.msra.mxu0 %v2039_v24 }
  0x17   :  { %106 = vperm.xlu0 %2007, %v2178_v16   ;;  %1077 = vmatprep.subr.bf16.mxu0 %v2040_v25 }
  0x18   :  { %151 = vperm.xlu1 %2010, %v44_v18  }
  0x19   :  { %1993 = vmatpush1.bf16.msra.mxu1 %v2039_v24  ;;  %v563_v24 = vld [vmem:[%s3295_s2] sm:$0x3] }
  0x1a   :  { %1978 = vmatprep.subr.bf16.mxu1 %v2040_v25  ;;  %1078 = vmatpush1.bf16.msra.mxu0 %v2042_v26 }
  0x1b   :  { %116 = vperm.xlu0 %2007, %v2191_v19   ;;  %1079 = vmatprep.subr.bf16.mxu0 %v2043_v28 }
  0x1c   :  { %156 = vperm.xlu1 %2010, %v45_v22  }
  0x1d   :  { %1994 = vmatpush1.bf16.msra.mxu1 %v2042_v26 }
  0x1e   :  { %1979 = vmatprep.subr.bf16.mxu1 %v2043_v28  ;;  %1080 = vmatpush1.bf16.msra.mxu0 %v2045_v29 }
  0x1f   :  { %126 = vperm.xlu0 %2007, %v2206_v23   ;;  %1081 = vmatprep.subr.bf16.mxu0 %v2046_v30 }
  0x20   :  { %2011 = vset.pattern.permute.xlu1 %v2074_v6 }
  0x21   :  { %309 = vperm.xlu1 %2011, %v29_v5   ;;  %1995 = vmatpush1.bf16.msra.mxu1 %v2045_v29 }
  0x22   :  { %1980 = vmatprep.subr.bf16.mxu1 %v2046_v30  ;;  %1082 = vmatpush1.bf16.msra.mxu0 %v2048_v31 }
  0x23   :  { %136 = vperm.xlu0 %2007, %v2221_v27   ;;  %1083 = vmatprep.subr.bf16.mxu0 %v2049_v33 }
  0x25   :  { %369 = vperm.xlu1 %2011, %v44_v18   ;;  %1996 = vmatpush1.bf16.msra.mxu1 %v2048_v31 }
  0x26   :  { %1981 = vmatprep.subr.bf16.mxu1 %v2049_v33  ;;  %1084 = vmatpush1.bf16.msra.mxu0 %v2051_v34 }
  0x27   :  { %2023 = vset.pattern.permute.xlu0 %v2074_v6  ;;  %1085 = vmatprep.subr.bf16.mxu0 %v2052_v36 }
  0x28   :  { %297 = vperm.xlu0 %2023, %v2123_v2  }
  0x29   :  { %2012 = vset.pattern.permute.xlu1 %v2073_v0  ;;  %1997 = vmatpush1.bf16.msra.mxu1 %v2051_v34 }
  0x2a   :  { %81 = vperm.xlu1 %2012, %v30_v32   ;;  %1982 = vmatprep.subr.bf16.mxu1 %v2052_v36 }
  0x2b   :  { %1086 = vmatpush1.bf16.msra.mxu0 %v2054_v37 }
  0x2c   :  { %365 = vperm.xlu0 %2023, %v2129_v3   ;;  %1087 = vmatprep.subr.bf16.mxu0 %v2055_v39  ;;  %v54_v3 = vld [vmem:[%s3292_s0 + $0xe0] sm:$0xff] }
  0x2d   :  { %1998 = vmatpush1.bf16.msra.mxu1 %v2054_v37 }
  0x2e   :  { %161 = vperm.xlu1 %2012, %v46_v35   ;;  %1983 = vmatprep.subr.bf16.mxu1 %v2055_v39 }
  0x2f   :  { %1088 = vmatpush1.bf16.msra.mxu0 %v2057_v40 }
  0x30   :  { %305 = vperm.xlu0 %2023, %v2168_v14   ;;  %1089 = vmatprep.subr.bf16.mxu0 %v2058_v41 }
  0x31   :  { %1999 = vmatpush1.bf16.msra.mxu1 %v2057_v40 }
  0x32   :  { %166 = vperm.xlu1 %2012, %v47_v38   ;;  %1984 = vmatprep.subr.bf16.mxu1 %v2058_v41 }
  0x33   :  { %1090 = vmatpush1.bf16.msra.mxu0 %v2060_v42 }
  0x34   :  { %373 = vperm.xlu0 %2023, %v45_v22   ;;  %1091 = vmatprep.subr.bf16.mxu0 %v2061_v43 }
  0x35   :  { %2000 = vmatpush1.bf16.msra.mxu1 %v2060_v42 }
  0x36   :  { %2013 = vset.pattern.permute.xlu1 %v2074_v6  ;;  %1985 = vmatprep.subr.bf16.mxu1 %v2061_v43 }
  0x37   :  { %317 = vperm.xlu1 %2013, %v2142_v7   ;;  %1092 = vmatpush1.bf16.msra.mxu0 %v2063_v44  ;;  %v220_v7 = vlaneseq }
  0x38   :  { %313 = vperm.xlu0 %2023, %v30_v32   ;;  %1093 = vmatprep.subr.bf16.mxu0 %v2064_v46 }
  0x39   :  { %2001 = vmatpush1.bf16.msra.mxu1 %v2063_v44  ;;  %v221_v9 = vshrl.u32 %v220_v7, 7 }
  0x3a   :  { %1986 = vmatprep.subr.bf16.mxu1 %v2064_v46 }
  0x3b   :  { %377 = vperm.xlu1 %2013, %v46_v35   ;;  %1094 = vmatpush1.bf16.msra.mxu0 %v2066_v47  ;;  %v2363_v13 = vsub.s32 1, %v221_v9  ;;  %v2375_v18 = vsub.s32 0, %v221_v9 }
  0x3c   :  { %381 = vperm.xlu0 %2023, %v47_v38   ;;  %1095 = vmatprep.subr.bf16.mxu0 %v2067_v48 }
  0x3d   :  { %2002 = vmatpush1.bf16.msra.mxu1 %v2066_v47  ;;  %v2393_v26 = vrot.slane %v58_v15, %v2375_v18  ;;  %v2399_v32 = vrot.slane %v563_v24, %v2363_v13  ;;  %v2411_v39 = vrot.slane %v563_v24, %v2375_v18 }
  0x3e   :  { %1987 = vmatprep.subr.bf16.mxu1 %v2067_v48 }
  0x3f   :  { %2014 = vset.pattern.permute.xlu1 %v2073_v0  ;;  %1096 = vmatpush1.bf16.msra.mxu0 %v2069_v51 }
  0x40   :  { %321 = vperm.xlu0 %2023, %v32_v45   ;;  %91 = vperm.xlu1 %2014, %v32_v45  }
  0x41   :  { %1097 = vmatprep.subr.bf16.mxu0 %v2070_v52  ;;  %2003 = vmatpush1.bf16.msra.mxu1 %v2069_v51 }
  0x42   :  { %1988 = vmatprep.subr.bf16.mxu1 %v2070_v52 }
  0x43   :  { %1098 = vmatpush1.bf16.msra.mxu0 %v2072_v54 }
  0x44   :  { %389 = vperm.xlu0 %2023, %v49_v49   ;;  %171 = vperm.xlu1 %2014, %v48_v50  }
  0x45   :  { %2004 = vmatpush1.bf16.msra.mxu1 %v2072_v54 }
  0x48   :  { %329 = vperm.xlu0 %2023, %v34_v53   ;;  %176 = vperm.xlu1 %2014, %v49_v49  }
  0x4c   :  { %397 = vperm.xlu0 %2023, %v51_v55   ;;  %2015 = vset.pattern.permute.xlu1 %v2074_v6 }
  0x4d   :  { %325 = vperm.xlu1 %2015, %v2157_v11   ;;  %v1938_v11 = vld [vmem:[%s3294_s1 + $0x1] ss:$2 sm:$0x3] }
  0x4e   :  { %v2384_v22 = vrot.slane %v1938_v11, %v2375_v18 }
  0x50   :  { %337 = vperm.xlu0 %2023, %v36_v56  }
  0x51   :  { %385 = vperm.xlu1 %2015, %v48_v50  }
  0x54   :  { %405 = vperm.xlu0 %2023, %v53_v57  }
  0x55   :  { %2016 = vset.pattern.permute.xlu1 %v2073_v0 }
  0x56   :  { %101 = vperm.xlu1 %2016, %v34_v53  }
  0x58   :  { %345 = vperm.xlu0 %2023, %v38_v58  }
  0x5a   :  { %181 = vperm.xlu1 %2016, %v50_v59  }
  0x5c   :  { %413 = vperm.xlu0 %2023, %v55_v60  }
  0x5e   :  { %186 = vperm.xlu1 %2016, %v51_v55  }
  0x60   :  { %353 = vperm.xlu0 %2023, %v40_v61  }
  0x62   :  { %2017 = vset.pattern.permute.xlu1 %v2074_v6 }
  0x63   :  { %333 = vperm.xlu1 %2017, %v2178_v16   ;;  %v2371_v16 = vrot.slane %v1938_v11, %v2363_v13 }
  0x64   :  { %421 = vperm.xlu0 %2023, %v2341_v62  }
  0x67   :  { %393 = vperm.xlu1 %2017, %v50_v59  }
  0x6b   :  { %2018 = vset.pattern.permute.xlu1 %v2073_v0 }
  0x6c   :  { %111 = vperm.xlu1 %2018, %v36_v56  }
  0x70   :  { %191 = vperm.xlu1 %2018, %v52_v63  }
  0x74   :  { %196 = vperm.xlu1 %2018, %v53_v57  }
  0x78   :  { %2019 = vset.pattern.permute.xlu1 %v2074_v6 }
  0x79   :  { %341 = vperm.xlu1 %2019, %v2191_v19   ;;  %v2378_v19 = vrot.slane %v58_v15, %v2363_v13 }
  0x7d   :  { %401 = vperm.xlu1 %2019, %v52_v63  }
  0x81   :  { %v142_v1 = vpop.permute.xlu1 %141  ;;  %2020 = vset.pattern.permute.xlu1 %v2073_v0 }
  0x82   :  { %v2353_v2 = vpop.permute.xlu0 %61  ;;  %121 = vperm.xlu1 %2020, %v38_v58   ;;  %v262_v36 = vmul.f32 %v2393_v26, %v142_v1  ;;  %v263_v37 = vmul.f32 %v2378_v19, %v142_v1 }
  0x83   :  { %v230_v54 = vmul.f32 %v2393_v26, %v2353_v2  ;;  %v231_v55 = vmul.f32 %v2378_v19, %v2353_v2 }
  0x85   :  { %v2358_v4 = vpop.permute.xlu1 %146 }
  0x86   :  { %v67_v5 = vpop.permute.xlu0 %66  ;;  %201 = vperm.xlu1 %2020, %v54_v3   ;;  %v264_v56 = vmul.f32 %v2393_v26, %v2358_v4  ;;  %v265_v58 = vmul.f32 %v2378_v19, %v2358_v4 }
  0x87   :  { %v233_v21 = vmul.f32 %v2378_v19, %v67_v5  ;;  %v232_v29 = vmul.f32 %v2393_v26, %v67_v5 }
  0x8a   :  { %v77_v8 = vpop.permute.xlu0 %76  ;;  %206 = vperm.xlu1 %2020, %v55_v60   ;;  %v302_v10 = vpop.permute.xlu1 %301 }
  0x8b   :  { %v437_v30 = vmul.f32 %v2384_v22, %v302_v10  ;;  %v237_v45 = vmul.f32 %v2378_v19, %v77_v8  ;;  %v236_v57 = vmul.f32 %v2393_v26, %v77_v8 }
  0x8d   :  { %v501_v40 = vadd.f32 %v437_v30, %v232_v29 }
  0x8e   :  { %v87_v12 = vpop.permute.xlu0 %86  ;;  %2021 = vset.pattern.permute.xlu1 %v2074_v6  ;;  %v362_v14 = vpop.permute.xlu1 %361 }
  0x8f   :  { %349 = vperm.xlu1 %2021, %v2206_v23   ;;  %v438_v23 = vmul.f32 %v2371_v16, %v302_v10  ;;  %v467_v33 = vmul.f32 %v2384_v22, %v362_v14  ;;  %v468_v34 = vmul.f32 %v2371_v16, %v362_v14  ;;  %v577_v46 = vadd.f32 %v2411_v39, %v501_v40 }
  0x90   :  { %v2435_v59 = vmul.f32 %v2393_v26, %v87_v12  ;;  %v2438_v60 = vmul.f32 %v2378_v19, %v87_v12 }
  0x91   :  { %v502_v31 = vadd.f32 %v438_v23, %v233_v21  ;;  %v531_v42 = vadd.f32 %v467_v33, %v262_v36  ;;  %v532_v43 = vadd.f32 %v468_v34, %v263_v37  ;;  %vm641_vm1 = vcmp.gt.f32.partialorder %v577_v46, 0.0 }
  0x92   :  { %v2373_v17 = vpop.permute.xlu0 %96  ;;  %v705_v2 = vmul.f32 0.2, %v577_v46 }
  0x93   :  { %409 = vperm.xlu1 %2021, %v54_v3   ;;  %v2380_v20 = vpop.permute.xlu1 %71  ;;  %v578_v41 = vadd.f32 %v2399_v32, %v502_v31  ;;  %v607_v49 = vadd.f32 %v2411_v39, %v531_v42  ;;  %v608_v53 = vadd.f32 %v2399_v32, %v532_v43 }
  0x94   :  { %v234_v10 = vmul.f32 %v2393_v26, %v2380_v20  ;;  %v235_v11 = vmul.f32 %v2378_v19, %v2380_v20  ;;  %v769_v23 = vsel %vm641_vm1, %v577_v46, %v705_v2 }
  0x95   :  { %vm642_vm0 = vcmp.gt.f32.partialorder %v578_v41, 0.0  ;;  %v706_v48 = vmul.f32 0.2, %v578_v41  ;;  %vm672_vm2 = vcmp.gt.f32.partialorder %v608_v53, 0.0  ;;  %v736_v4 = vmul.f32 0.2, %v608_v53 }
  0x96   :  { %v2390_v25 = vpop.permute.xlu0 %106  ;;  %v735_v5 = vmul.f32 0.2, %v607_v49  ;;  %vm671_vm3 = vcmp.gt.f32.partialorder %v607_v49, 0.0 }
  0x97   :  { %2022 = vset.pattern.permute.xlu1 %v2073_v0  ;;  %v152_v28 = vpop.permute.xlu1 %151  ;;  %v56_v0 = vld [vmem:[%s3292_s0 + $0xf0] sm:$0xff]  ;;  %v2442_v1 = vsel %vm642_vm0, %v578_v41, %v706_v48  ;;  %v2459_v31 = vsel %vm672_vm2, %v608_v53, %v736_v4 }
  0x98   :  { %131 = vperm.xlu1 %2022, %v40_v61   ;;  %v266_v7 = vmul.f32 %v2393_v26, %v152_v28  ;;  %v267_v14 = vmul.f32 %v2378_v19, %v152_v28  ;;  %v2461_v33 = vsel %vm671_vm3, %v607_v49, %v735_v5 }
  0x9a   :  { %v2403_v35 = vpop.permute.xlu0 %116 }
  0x9b   :  { %v157_v38 = vpop.permute.xlu1 %156 }
  0x9c   :  { %211 = vperm.xlu1 %2022, %v56_v0   ;;  %v268_v20 = vmul.f32 %v2393_v26, %v157_v38  ;;  %v269_v34 = vmul.f32 %v2378_v19, %v157_v38 }
  0x9e   :  { %v2414_v44 = vpop.permute.xlu0 %126 }
  0xa0   :  { %216 = vperm.xlu1 %2022, %v2341_v62   ;;  %v310_v47 = vpop.permute.xlu1 %309 }
  0xa1   :  { %v441_v50 = vmul.f32 %v2384_v22, %v310_v47  ;;  %v442_v51 = vmul.f32 %v2371_v16, %v310_v47 }
  0xa2   :  { %v2422_v52 = vpop.permute.xlu0 %136 }
  0xa3   :  { %v506_v61 = vadd.f32 %v442_v51, %v237_v45  ;;  %v505_v62 = vadd.f32 %v441_v50, %v236_v57 }
  0xa4   :  { %2024 = vset.pattern.permute.xlu1 %v2074_v6  ;;  %v370_v63 = vpop.permute.xlu1 %369 }
  0xa5   :  { %v471_v3 = vmul.f32 %v2384_v22, %v370_v63  ;;  %357 = vperm.xlu1 %2024, %v2221_v27   ;;  %v582_v8 = vadd.f32 %v2399_v32, %v506_v61  ;;  %v472_v9 = vmul.f32 %v2371_v16, %v370_v63  ;;  %v581_v15 = vadd.f32 %v2411_v39, %v505_v62 }
  0xa7   :  { %v298_v6 = vpop.permute.xlu0 %297  ;;  %v535_v21 = vadd.f32 %v471_v3, %v266_v7  ;;  %v536_v36 = vadd.f32 %v472_v9, %v267_v14  ;;  %vm646_vm4 = vcmp.gt.f32.partialorder %v582_v8, 0.0  ;;  %v710_v43 = vmul.f32 0.2, %v582_v8 }
  0xa8   :  { %v435_v12 = vmul.f32 %v2384_v22, %v298_v6  ;;  %v436_v27 = vmul.f32 %v2371_v16, %v298_v6  ;;  %vm645_vm5 = vcmp.gt.f32.partialorder %v581_v15, 0.0  ;;  %v709_v45 = vmul.f32 0.2, %v581_v15 }
  0xa9   :  { %417 = vperm.xlu1 %2024, %v56_v0   ;;  %v82_v30 = vpop.permute.xlu1 %81  ;;  %v2470_v42 = vadd.f32 %v2411_v39, %v535_v21  ;;  %v2473_v49 = vadd.f32 %v2399_v32, %v536_v36  ;;  %v774_v7 = vsel %vm646_vm4, %v582_v8, %v710_v43 }
  0xaa   :  { %v499_v24 = vadd.f32 %v435_v12, %v230_v54  ;;  %v500_v29 = vadd.f32 %v436_v27, %v231_v55  ;;  %v2476_v50 = vmul.f32 %v2393_v26, %v82_v30  ;;  %v773_v12 = vsel %vm645_vm5, %v581_v15, %v709_v45 }
  0xab   :  { %v366_v28 = vpop.permute.xlu0 %365  ;;  %vm676_vm10 = vcmp.gt.f32.partialorder %v2473_v49, 0.0  ;;  %v740_v8 = vmul.f32 0.2, %v2473_v49  ;;  %vm675_vm11 = vcmp.gt.f32.partialorder %v2470_v42, 0.0 }
  0xac   :  { %v575_v37 = vadd.f32 %v2411_v39, %v499_v24  ;;  %v469_v40 = vmul.f32 %v2384_v22, %v366_v28  ;;  %v470_v41 = vmul.f32 %v2371_v16, %v366_v28  ;;  %v576_v0 = vadd.f32 %v2399_v32, %v500_v29 }
  0xad   :  { %v162_v38 = vpop.permute.xlu1 %161 }
  0xae   :  { %v533_v46 = vadd.f32 %v469_v40, %v264_v56  ;;  %v534_v47 = vadd.f32 %v470_v41, %v265_v58  ;;  %vm640_vm6 = vcmp.gt.f32.partialorder %v576_v0, 0.0  ;;  %v704_v48 = vmul.f32 0.2, %v576_v0 }
  0xaf   :  { %v306_v51 = vpop.permute.xlu0 %305  ;;  %vm639_vm7 = vcmp.gt.f32.partialorder %v575_v37, 0.0  ;;  %v703_v53 = vmul.f32 0.2, %v575_v37  ;;  %v239_v58 = vmul.f32 %v2378_v19, %v82_v30 }
  0xb0   :  { %v609_v54 = vadd.f32 %v2411_v39, %v533_v46  ;;  %v439_v55 = vmul.f32 %v2384_v22, %v306_v51  ;;  %v440_v57 = vmul.f32 %v2371_v16, %v306_v51  ;;  %v768_v56 = vsel %vm640_vm6, %v576_v0, %v704_v48 }
  0xb1   :  { %v832_v61 = vpack.c.bf16 %v2442_v1, %v768_v56  ;;  %v767_v62 = vsel %vm639_vm7, %v575_v37, %v703_v53  ;;  %v610_v63 = vadd.f32 %v2399_v32, %v534_v47  ;;  %v2484_v4 = vpop.permute.xlu1 %166  ;;  %v270_v46 = vmul.f32 %v2393_v26, %v162_v38 }
  0xb2   :  { %v503_v2 = vadd.f32 %v439_v55, %v234_v10  ;;  %v504_v3 = vadd.f32 %v440_v57, %v235_v11  ;;  %v831_v5 = vpack.c.bf16 %v769_v23, %v767_v62  ;;  %vm673_vm9 = vcmp.gt.f32.partialorder %v609_v54, 0.0 }
  0xb3   :  { %1099 = vmatprep.mubr.bf16.mxu0 %v832_v61  ;;  %v374_v9 = vpop.permute.xlu0 %373  ;;  %vm674_vm8 = vcmp.gt.f32.partialorder %v610_v63, 0.0  ;;  %v738_v6 = vmul.f32 0.2, %v610_v63  ;;  %v737_v21 = vmul.f32 0.2, %v609_v54  ;;  %v271_v53 = vmul.f32 %v2378_v19, %v162_v38 }
  0xb4   :  { %v579_v27 = vadd.f32 %v2411_v39, %v503_v2  ;;  %v580_v1 = vadd.f32 %v2399_v32, %v504_v3  ;;  %v473_v14 = vmul.f32 %v2384_v22, %v374_v9  ;;  %v474_v10 = vmul.f32 %v2371_v16, %v374_v9  ;;  %1100 = vmatmul.mubr.bf16.vlgmr.msra.gmra.mrb[0].mxu0 %v831_v5 }
  0xb5   :  { %v802_v11 = vsel %vm674_vm8, %v610_v63, %v738_v6  ;;  %v801_v36 = vsel %vm673_vm9, %v609_v54, %v737_v21  ;;  %v273_v62 = vmul.f32 %v2378_v19, %v2484_v4 }
  0xb6   :  { %v537_v23 = vadd.f32 %v473_v14, %v268_v20  ;;  %v538_v24 = vadd.f32 %v474_v10, %v269_v34  ;;  %v848_v15 = vpack.c.bf16 %v802_v11, %v2459_v31  ;;  %vm644_vm12 = vcmp.gt.f32.partialorder %v580_v1, 0.0  ;;  %v318_v29 = vpop.permute.xlu1 %317 }
  0xb7   :  { %v314_v30 = vpop.permute.xlu0 %313  ;;  %v708_v28 = vmul.f32 0.2, %v580_v1  ;;  %vm643_vm13 = vcmp.gt.f32.partialorder %v579_v27, 0.0  ;;  %v707_v37 = vmul.f32 0.2, %v579_v27  ;;  %v445_v41 = vmul.f32 %v2384_v22, %v318_v29 }
  0xb8   :  { %v614_v40 = vadd.f32 %v2399_v32, %v538_v24  ;;  %v446_v0 = vmul.f32 %v2371_v16, %v318_v29  ;;  %1179 = vmatprep.mubr.bf16.mxu1 %v848_v15  ;;  %v739_v20 = vmul.f32 0.2, %v2470_v42  ;;  %v443_v34 = vmul.f32 %v2384_v22, %v314_v30 }
  0xb9   :  { %v444_v31 = vmul.f32 %v2371_v16, %v314_v30  ;;  %v847_v43 = vpack.c.bf16 %v801_v36, %v2461_v33  ;;  %v772_v45 = vsel %vm644_vm12, %v580_v1, %v708_v28  ;;  %v771_v51 = vsel %vm643_vm13, %v579_v27, %v707_v37 }
  0xba   :  { %v510_v47 = vadd.f32 %v446_v0, %v2438_v60  ;;  %v834_v48 = vpack.c.bf16 %v774_v7, %v772_v45  ;;  %v613_v54 = vadd.f32 %v2411_v39, %v537_v23  ;;  %v378_v57 = vpop.permute.xlu1 %377  ;;  %v833_v61 = vpack.c.bf16 %v773_v12, %v771_v51 }
  0xbb   :  { %v508_v55 = vadd.f32 %v444_v31, %v239_v58  ;;  %1180 = vmatmul.mubr.bf16.vlgmr.msra.gmra.mrb[0].mxu1 %v847_v43  ;;  %v382_v56 = vpop.permute.xlu0 %381  ;;  %v509_v33 = vadd.f32 %v445_v41, %v2435_v59  ;;  %v475_v63 = vmul.f32 %v2384_v22, %v378_v57  ;;  %v476_v60 = vmul.f32 %v2371_v16, %v378_v57 }
  0xbc   :  { %1109 = vmatprep.mubr.bf16.mxu0 %v834_v48  ;;  %v507_v2 = vadd.f32 %v443_v34, %v2476_v50  ;;  %v477_v38 = vmul.f32 %v2384_v22, %v382_v56  ;;  %v478_v58 = vmul.f32 %v2371_v16, %v382_v56  ;;  %vm678_vm14 = vcmp.gt.f32.partialorder %v614_v40, 0.0 }
  0xbd   :  { %1110 = vmatmul.mubr.bf16.gmra.mrb[4].mxu0 %v833_v61  ;;  %v586_v3 = vadd.f32 %v2399_v32, %v510_v47  ;;  %v584_v5 = vadd.f32 %v2399_v32, %v508_v55  ;;  %v540_v7 = vadd.f32 %v476_v60, %v271_v53  ;;  %v742_v9 = vmul.f32 0.2, %v614_v40 }
  0xbe   :  { %v272_v59 = vmul.f32 %v2393_v26, %v2484_v4  ;;  %v542_v6 = vadd.f32 %v478_v58, %v273_v62  ;;  %vm677_vm15 = vcmp.gt.f32.partialorder %v613_v54, 0.0  ;;  %v741_v12 = vmul.f32 0.2, %v613_v54 }
  0xbf   :  { %v539_v27 = vadd.f32 %v475_v63, %v270_v46  ;;  %v804_v50 = vsel %vm676_vm10, %v2473_v49, %v740_v8  ;;  %v806_v1 = vsel %vm678_vm14, %v614_v40, %v742_v9  ;;  %v92_v14 = vpop.permute.xlu1 %91  ;;  %v803_v10 = vsel %vm675_vm11, %v2470_v42, %v739_v20  ;;  %v322_v24 = vpop.permute.xlu0 %321 }
  0xc0   :  { %v585_v11 = vadd.f32 %v2411_v39, %v509_v33  ;;  %v583_v21 = vadd.f32 %v2411_v39, %v507_v2  ;;  %v541_v23 = vadd.f32 %v477_v38, %v272_v59  ;;  %v850_v4 = vpack.c.bf16 %v806_v1, %v804_v50 }
  0xc1   :  { %v616_v15 = vadd.f32 %v2399_v32, %v540_v7  ;;  %v805_v29 = vsel %vm677_vm15, %v613_v54, %v741_v12  ;;  %vm648_vm0 = vcmp.gt.f32.partialorder %v584_v5, 0.0  ;;  %vm650_vm1 = vcmp.gt.f32.partialorder %v586_v3, 0.0 }
  0xc2   :  { %v618_v49 = vadd.f32 %v2399_v32, %v542_v6  ;;  %1189 = vmatprep.mubr.bf16.mxu1 %v850_v4  ;;  %v849_v8 = vpack.c.bf16 %v805_v29, %v803_v10  ;;  %v712_v30 = vmul.f32 0.2, %v584_v5  ;;  %v714_v36 = vmul.f32 0.2, %v586_v3 }
  0xc3   :  { %v615_v42 = vadd.f32 %v2411_v39, %v539_v27  ;;  %v447_v28 = vmul.f32 %v2384_v22, %v322_v24  ;;  %v448_v37 = vmul.f32 %v2371_v16, %v322_v24  ;;  %v172_v40 = vpop.permute.xlu1 %171  ;;  %v242_v41 = vmul.f32 %v2393_v26, %v92_v14  ;;  %v390_v56 = vpop.permute.xlu0 %389 }
  0xc4   :  { %v243_v0 = vmul.f32 %v2378_v19, %v92_v14  ;;  %1190 = vmatmul.mubr.bf16.gmra.mrb[4].mxu1 %v849_v8  ;;  %v776_v20 = vsel %vm648_vm0, %v584_v5, %v712_v30  ;;  %v778_v34 = vsel %vm650_vm1, %v586_v3, %v714_v36  ;;  %v617_v31 = vadd.f32 %v2411_v39, %v541_v23 }
  0xc5   :  { %v836_v43 = vpack.c.bf16 %v778_v34, %v776_v20  ;;  %vm647_vm2 = vcmp.gt.f32.partialorder %v583_v21, 0.0  ;;  %vm649_vm3 = vcmp.gt.f32.partialorder %v585_v11, 0.0  ;;  %v711_v45 = vmul.f32 0.2, %v583_v21 }
  0xc6   :  { %v713_v46 = vmul.f32 0.2, %v585_v11  ;;  %vm680_vm4 = vcmp.gt.f32.partialorder %v616_v15, 0.0  ;;  %vm682_vm5 = vcmp.gt.f32.partialorder %v618_v49, 0.0  ;;  %v744_v47 = vmul.f32 0.2, %v616_v15 }
  0xc7   :  { %1119 = vmatprep.mubr.bf16.mxu0 %v836_v43  ;;  %v746_v48 = vmul.f32 0.2, %v618_v49  ;;  %v177_v51 = vpop.permute.xlu1 %176  ;;  %v511_v53 = vadd.f32 %v447_v28, %v242_v41  ;;  %v512_v54 = vadd.f32 %v448_v37, %v243_v0  ;;  %v775_v55 = vsel %vm647_vm2, %v583_v21, %v711_v45 }
  0xc8   :  { %v777_v57 = vsel %vm649_vm3, %v585_v11, %v713_v46  ;;  %v808_v62 = vsel %vm680_vm4, %v616_v15, %v744_v47  ;;  %v276_v63 = vmul.f32 %v2393_v26, %v177_v51  ;;  %v277_v2 = vmul.f32 %v2378_v19, %v177_v51 }
  0xc9   :  { %v835_v61 = vpack.c.bf16 %v777_v57, %v775_v55  ;;  %v810_v33 = vsel %vm682_vm5, %v618_v49, %v746_v48  ;;  %vm679_vm6 = vcmp.gt.f32.partialorder %v615_v42, 0.0  ;;  %vm681_vm7 = vcmp.gt.f32.partialorder %v617_v31, 0.0 }
  0xca   :  { %v852_v60 = vpack.c.bf16 %v810_v33, %v808_v62  ;;  %v244_v38 = vmul.f32 %v2393_v26, %v2373_v17  ;;  %v743_v58 = vmul.f32 0.2, %v615_v42  ;;  %v745_v3 = vmul.f32 0.2, %v617_v31 }
  0xcb   :  { %1120 = vmatmul.mubr.bf16.gmra.mrb[8].mxu0 %v835_v61  ;;  %v245_v5 = vmul.f32 %v2378_v19, %v2373_v17  ;;  %v587_v7 = vadd.f32 %v2411_v39, %v511_v53  ;;  %v481_v9 = vmul.f32 %v2384_v22, %v390_v56  ;;  %v482_v59 = vmul.f32 %v2371_v16, %v390_v56  ;;  %v330_v56 = vpop.permute.xlu0 %329 }
  0xcc   :  { %1199 = vmatprep.mubr.bf16.mxu1 %v852_v60  ;;  %v326_v6 = vpop.permute.xlu1 %325  ;;  %v807_v12 = vsel %vm679_vm6, %v615_v42, %v743_v58  ;;  %v809_v27 = vsel %vm681_vm7, %v617_v31, %v745_v3  ;;  %v588_v14 = vadd.f32 %v2399_v32, %v512_v54  ;;  %v274_v4 = vmul.f32 %v2393_v26, %v172_v40 }
  0xcd   :  { %v449_v50 = vmul.f32 %v2384_v22, %v326_v6  ;;  %v450_v1 = vmul.f32 %v2371_v16, %v326_v6  ;;  %v545_v10 = vadd.f32 %v481_v9, %v276_v63  ;;  %v546_v11 = vadd.f32 %v482_v59, %v277_v2 }
  0xce   :  { %v851_v21 = vpack.c.bf16 %v809_v27, %v807_v12  ;;  %v275_v24 = vmul.f32 %v2378_v19, %v172_v40  ;;  %v716_v28 = vmul.f32 0.2, %v588_v14  ;;  %v715_v37 = vmul.f32 0.2, %v587_v7 }
  0xcf   :  { %v513_v17 = vadd.f32 %v449_v50, %v244_v38  ;;  %v514_v23 = vadd.f32 %v450_v1, %v245_v5  ;;  %v621_v36 = vadd.f32 %v2411_v39, %v545_v10  ;;  %v622_v42 = vadd.f32 %v2399_v32, %v546_v11  ;;  %v398_v27 = vpop.permute.xlu0 %397 }
  0xd0   :  { %1200 = vmatmul.mubr.bf16.gmra.mrb[8].mxu1 %v851_v21  ;;  %v386_v15 = vpop.permute.xlu1 %385  ;;  %vm652_vm8 = vcmp.gt.f32.partialorder %v588_v14, 0.0  ;;  %vm651_vm9 = vcmp.gt.f32.partialorder %v587_v7, 0.0  ;;  %v451_v3 = vmul.f32 %v2384_v22, %v330_v56  ;;  %v452_v5 = vmul.f32 %v2371_v16, %v330_v56 }
  0xd1   :  { %v589_v29 = vadd.f32 %v2411_v39, %v513_v17  ;;  %v590_v49 = vadd.f32 %v2399_v32, %v514_v23  ;;  %v479_v8 = vmul.f32 %v2384_v22, %v386_v15  ;;  %v480_v30 = vmul.f32 %v2371_v16, %v386_v15 }
  0xd2   :  { %v780_v45 = vsel %vm652_vm8, %v588_v14, %v716_v28  ;;  %v779_v47 = vsel %vm651_vm9, %v587_v7, %v715_v37  ;;  %v750_v54 = vmul.f32 0.2, %v622_v42  ;;  %v749_v55 = vmul.f32 0.2, %v621_v36 }
  0xd3   :  { %v543_v41 = vadd.f32 %v479_v8, %v274_v4  ;;  %v544_v0 = vadd.f32 %v480_v30, %v275_v24  ;;  %vm654_vm10 = vcmp.gt.f32.partialorder %v590_v49, 0.0  ;;  %v718_v40 = vmul.f32 0.2, %v590_v49 }
  0xd4   :  { %vm653_vm11 = vcmp.gt.f32.partialorder %v589_v29, 0.0  ;;  %v717_v20 = vmul.f32 0.2, %v589_v29  ;;  %vm686_vm13 = vcmp.gt.f32.partialorder %v622_v42, 0.0  ;;  %vm685_vm14 = vcmp.gt.f32.partialorder %v621_v36, 0.0 }
  0xd5   :  { %v619_v34 = vadd.f32 %v2411_v39, %v543_v41  ;;  %v620_v31 = vadd.f32 %v2399_v32, %v544_v0  ;;  %v102_v43 = vpop.permute.xlu1 %101  ;;  %v782_v46 = vsel %vm654_vm10, %v590_v49, %v718_v40  ;;  %v814_v2 = vsel %vm686_vm13, %v622_v42, %v750_v54 }
  0xd6   :  { %v781_v48 = vsel %vm653_vm11, %v589_v29, %v717_v20  ;;  %v838_v51 = vpack.c.bf16 %v782_v46, %v780_v45  ;;  %v246_v33 = vmul.f32 %v2393_v26, %v102_v43  ;;  %v247_v63 = vmul.f32 %v2378_v19, %v102_v43 }
  0xd7   :  { %v837_v53 = vpack.c.bf16 %v781_v48, %v779_v47  ;;  %vm684_vm12 = vcmp.gt.f32.partialorder %v620_v31, 0.0  ;;  %v748_v57 = vmul.f32 0.2, %v620_v31  ;;  %vm683_vm15 = vcmp.gt.f32.partialorder %v619_v34, 0.0 }
  0xd8   :  { %1129 = vmatprep.mubr.bf16.mxu0 %v838_v51  ;;  %v747_v62 = vmul.f32 0.2, %v619_v34  ;;  %v813_v58 = vsel %vm685_vm14, %v621_v36, %v749_v55  ;;  %v515_v6 = vadd.f32 %v451_v3, %v246_v33  ;;  %v516_v12 = vadd.f32 %v452_v5, %v247_v63 }
  0xd9   :  { %v182_v61 = vpop.permute.xlu1 %181  ;;  %1130 = vmatmul.mubr.bf16.gmra.mrb[12].mxu0 %v837_v53  ;;  %v812_v60 = vsel %vm684_vm12, %v620_v31, %v748_v57  ;;  %v485_v14 = vmul.f32 %v2384_v22, %v398_v27  ;;  %v486_v10 = vmul.f32 %v2371_v16, %v398_v27  ;;  %v248_v23 = vmul.f32 %v2393_v26, %v2390_v25 }
  0xda   :  { %v811_v38 = vsel %vm683_vm15, %v619_v34, %v747_v62  ;;  %v854_v7 = vpack.c.bf16 %v814_v2, %v812_v60  ;;  %v591_v11 = vadd.f32 %v2411_v39, %v515_v6  ;;  %v592_v21 = vadd.f32 %v2399_v32, %v516_v12 }
  0xdb   :  { %v853_v9 = vpack.c.bf16 %v813_v58, %v811_v38  ;;  %v249_v4 = vmul.f32 %v2378_v19, %v2390_v25  ;;  %v278_v8 = vmul.f32 %v2393_v26, %v182_v61  ;;  %v279_v42 = vmul.f32 %v2378_v19, %v182_v61  ;;  %v338_v38 = vpop.permute.xlu0 %337 }
  0xdc   :  { %1209 = vmatprep.mubr.bf16.mxu1 %v854_v7  ;;  %vm656_vm0 = vcmp.gt.f32.partialorder %v592_v21, 0.0  ;;  %v720_v37 = vmul.f32 0.2, %v592_v21  ;;  %v719_v41 = vmul.f32 0.2, %v591_v11  ;;  %vm655_vm1 = vcmp.gt.f32.partialorder %v591_v11, 0.0 }
  0xdd   :  { %v187_v59 = vpop.permute.xlu1 %186  ;;  %1210 = vmatmul.mubr.bf16.gmra.mrb[12].mxu1 %v853_v9  ;;  %v455_v27 = vmul.f32 %v2384_v22, %v338_v38 }
  0xde   :  { %v280_v50 = vmul.f32 %v2393_v26, %v187_v59  ;;  %v281_v1 = vmul.f32 %v2378_v19, %v187_v59  ;;  %v784_v47 = vsel %vm656_vm0, %v592_v21, %v720_v37  ;;  %v783_v57 = vsel %vm655_vm1, %v591_v11, %v719_v41 }
  0xdf   :  { %v406_v21 = vpop.permute.xlu0 %405 }
  0xe0   :  { %v549_v29 = vadd.f32 %v485_v14, %v280_v50  ;;  %v550_v49 = vadd.f32 %v486_v10, %v281_v1  ;;  %v456_v50 = vmul.f32 %v2371_v16, %v338_v38 }
  0xe2   :  { %v334_v17 = vpop.permute.xlu1 %333  ;;  %v625_v34 = vadd.f32 %v2411_v39, %v549_v29  ;;  %v626_v31 = vadd.f32 %v2399_v32, %v550_v49 }
  0xe3   :  { %v453_v24 = vmul.f32 %v2384_v22, %v334_v17  ;;  %v454_v15 = vmul.f32 %v2371_v16, %v334_v17 }
  0xe4   :  { %vm690_vm4 = vcmp.gt.f32.partialorder %v626_v31, 0.0  ;;  %v754_v62 = vmul.f32 0.2, %v626_v31  ;;  %v753_v60 = vmul.f32 0.2, %v625_v34  ;;  %vm689_vm7 = vcmp.gt.f32.partialorder %v625_v34, 0.0 }
  0xe5   :  { %v517_v30 = vadd.f32 %v453_v24, %v248_v23  ;;  %v518_v36 = vadd.f32 %v454_v15, %v249_v4  ;;  %v489_v4 = vmul.f32 %v2384_v22, %v406_v21  ;;  %v490_v24 = vmul.f32 %v2371_v16, %v406_v21 }
  0xe6   :  { %v394_v28 = vpop.permute.xlu1 %393  ;;  %v818_v9 = vsel %vm690_vm4, %v626_v31, %v754_v62  ;;  %v817_v12 = vsel %vm689_vm7, %v625_v34, %v753_v60 }
  0xe7   :  { %v593_v0 = vadd.f32 %v2411_v39, %v517_v30  ;;  %v594_v25 = vadd.f32 %v2399_v32, %v518_v36  ;;  %v483_v40 = vmul.f32 %v2384_v22, %v394_v28  ;;  %v484_v20 = vmul.f32 %v2371_v16, %v394_v28 }
  0xe8   :  { %v253_v30 = vmul.f32 %v2378_v19, %v2403_v35 }
  0xe9   :  { %v547_v43 = vadd.f32 %v483_v40, %v278_v8  ;;  %v548_v45 = vadd.f32 %v484_v20, %v279_v42  ;;  %vm658_vm2 = vcmp.gt.f32.partialorder %v594_v25, 0.0  ;;  %v722_v46 = vmul.f32 0.2, %v594_v25 }
  0xea   :  { %vm657_vm3 = vcmp.gt.f32.partialorder %v593_v0, 0.0  ;;  %v721_v48 = vmul.f32 0.2, %v593_v0  ;;  %v252_v8 = vmul.f32 %v2393_v26, %v2403_v35 }
  0xeb   :  { %v623_v51 = vadd.f32 %v2411_v39, %v547_v43  ;;  %v624_v53 = vadd.f32 %v2399_v32, %v548_v45  ;;  %v112_v54 = vpop.permute.xlu1 %111  ;;  %v786_v55 = vsel %vm658_vm2, %v594_v25, %v722_v46 }
  0xec   :  { %v840_v56 = vpack.c.bf16 %v786_v55, %v784_v47  ;;  %v785_v61 = vsel %vm657_vm3, %v593_v0, %v721_v48  ;;  %v250_v5 = vmul.f32 %v2393_v26, %v112_v54  ;;  %v251_v7 = vmul.f32 %v2378_v19, %v112_v54 }
  0xed   :  { %v839_v33 = vpack.c.bf16 %v785_v61, %v783_v57  ;;  %vm688_vm5 = vcmp.gt.f32.partialorder %v624_v53, 0.0  ;;  %v752_v63 = vmul.f32 0.2, %v624_v53  ;;  %vm687_vm6 = vcmp.gt.f32.partialorder %v623_v51, 0.0 }
  0xee   :  { %1139 = vmatprep.mubr.bf16.mxu0 %v840_v56  ;;  %v751_v2 = vmul.f32 0.2, %v623_v51  ;;  %v519_v10 = vadd.f32 %v455_v27, %v250_v5  ;;  %v520_v11 = vadd.f32 %v456_v50, %v251_v7 }
  0xef   :  { %v192_v58 = vpop.permute.xlu1 %191  ;;  %1140 = vmatmul.mubr.bf16.gmra.mrb[16].mxu0 %v839_v33  ;;  %v816_v3 = vsel %vm688_vm5, %v624_v53, %v752_v63 }
  0xf0   :  { %v856_v59 = vpack.c.bf16 %v818_v9, %v816_v3  ;;  %v815_v6 = vsel %vm687_vm6, %v623_v51, %v751_v2  ;;  %v595_v15 = vadd.f32 %v2411_v39, %v519_v10  ;;  %v596_v29 = vadd.f32 %v2399_v32, %v520_v11  ;;  %v346_v9 = vpop.permute.xlu0 %345 }
  0xf1   :  { %v855_v1 = vpack.c.bf16 %v817_v12, %v815_v6  ;;  %v282_v41 = vmul.f32 %v2393_v26, %v192_v58  ;;  %v283_v40 = vmul.f32 %v2378_v19, %v192_v58  ;;  %v459_v11 = vmul.f32 %v2384_v22, %v346_v9 }
  0xf2   :  { %1219 = vmatprep.mubr.bf16.mxu1 %v856_v59  ;;  %vm660_vm8 = vcmp.gt.f32.partialorder %v596_v29, 0.0  ;;  %v724_v34 = vmul.f32 0.2, %v596_v29  ;;  %v723_v31 = vmul.f32 0.2, %v595_v15  ;;  %vm659_vm9 = vcmp.gt.f32.partialorder %v595_v15, 0.0 }
  0xf3   :  { %v197_v14 = vpop.permute.xlu1 %196  ;;  %1220 = vmatmul.mubr.bf16.gmra.mrb[16].mxu1 %v855_v1  ;;  %v460_v21 = vmul.f32 %v2371_v16, %v346_v9 }
  0xf4   :  { %v284_v17 = vmul.f32 %v2393_v26, %v197_v14  ;;  %v285_v23 = vmul.f32 %v2378_v19, %v197_v14  ;;  %v788_v55 = vsel %vm660_vm8, %v596_v29, %v724_v34  ;;  %v787_v63 = vsel %vm659_vm9, %v595_v15, %v723_v31  ;;  %v414_v15 = vpop.permute.xlu0 %413 }
  0xf6   :  { %v553_v28 = vadd.f32 %v489_v4, %v284_v17  ;;  %v554_v37 = vadd.f32 %v490_v24, %v285_v23 }
  0xf8   :  { %v342_v49 = vpop.permute.xlu1 %341  ;;  %v629_v47 = vadd.f32 %v2411_v39, %v553_v28  ;;  %v630_v48 = vadd.f32 %v2399_v32, %v554_v37  ;;  %v256_v37 = vmul.f32 %v2393_v26, %v2414_v44  ;;  %v354_v9 = vpop.permute.xlu0 %353 }
  0xf9   :  { %v457_v36 = vmul.f32 %v2384_v22, %v342_v49  ;;  %v458_v42 = vmul.f32 %v2371_v16, %v342_v49 }
  0xfa   :  { %vm694_vm12 = vcmp.gt.f32.partialorder %v630_v48, 0.0  ;;  %v758_v38 = vmul.f32 0.2, %v630_v48  ;;  %v757_v5 = vmul.f32 0.2, %v629_v47  ;;  %vm693_vm15 = vcmp.gt.f32.partialorder %v629_v47, 0.0 }
  0xfb   :  { %v521_v0 = vadd.f32 %v457_v36, %v252_v8  ;;  %v522_v25 = vadd.f32 %v458_v42, %v253_v30  ;;  %v493_v8 = vmul.f32 %v2384_v22, %v414_v15  ;;  %v494_v30 = vmul.f32 %v2371_v16, %v414_v15 }
  0xfc   :  { %v402_v20 = vpop.permute.xlu1 %401  ;;  %v822_v50 = vsel %vm694_vm12, %v630_v48, %v758_v38  ;;  %v821_v10 = vsel %vm693_vm15, %v629_v47, %v757_v5 }
  0xfd   :  { %v597_v43 = vadd.f32 %v2411_v39, %v521_v0  ;;  %v598_v35 = vadd.f32 %v2399_v32, %v522_v25  ;;  %v487_v45 = vmul.f32 %v2384_v22, %v402_v20  ;;  %v488_v46 = vmul.f32 %v2371_v16, %v402_v20 }
  0xff   :  { %v551_v51 = vadd.f32 %v487_v45, %v282_v41  ;;  %v552_v53 = vadd.f32 %v488_v46, %v283_v40  ;;  %vm662_vm10 = vcmp.gt.f32.partialorder %v598_v35, 0.0  ;;  %v726_v54 = vmul.f32 0.2, %v598_v35 }
 0x100   :  { %vm661_vm11 = vcmp.gt.f32.partialorder %v597_v43, 0.0  ;;  %v725_v57 = vmul.f32 0.2, %v597_v43  ;;  %v257_v41 = vmul.f32 %v2378_v19, %v2414_v44 }
 0x101   :  { %v627_v56 = vadd.f32 %v2411_v39, %v551_v51  ;;  %v628_v61 = vadd.f32 %v2399_v32, %v552_v53  ;;  %v122_v62 = vpop.permute.xlu1 %121  ;;  %v790_v33 = vsel %vm662_vm10, %v598_v35, %v726_v54 }
 0x102   :  { %v842_v60 = vpack.c.bf16 %v790_v33, %v788_v55  ;;  %v789_v2 = vsel %vm661_vm11, %v597_v43, %v725_v57  ;;  %v254_v12 = vmul.f32 %v2393_v26, %v122_v62  ;;  %v255_v27 = vmul.f32 %v2378_v19, %v122_v62 }
 0x103   :  { %v841_v58 = vpack.c.bf16 %v789_v2, %v787_v63  ;;  %vm692_vm13 = vcmp.gt.f32.partialorder %v628_v61, 0.0  ;;  %v756_v3 = vmul.f32 0.2, %v628_v61  ;;  %vm691_vm14 = vcmp.gt.f32.partialorder %v627_v56, 0.0 }
 0x104   :  { %1149 = vmatprep.mubr.bf16.mxu0 %v842_v60  ;;  %v755_v7 = vmul.f32 0.2, %v627_v56  ;;  %v523_v4 = vadd.f32 %v459_v11, %v254_v12  ;;  %v524_v24 = vadd.f32 %v460_v21, %v255_v27 }
 0x105   :  { %v202_v59 = vpop.permute.xlu1 %201  ;;  %1150 = vmatmul.mubr.bf16.gmra.mrb[20].mxu0 %v841_v58  ;;  %v820_v6 = vsel %vm692_vm13, %v628_v61, %v756_v3 }
 0x106   :  { %v858_v1 = vpack.c.bf16 %v822_v50, %v820_v6  ;;  %v819_v14 = vsel %vm691_vm14, %v627_v56, %v755_v7  ;;  %v599_v36 = vadd.f32 %v2411_v39, %v523_v4  ;;  %v600_v42 = vadd.f32 %v2399_v32, %v524_v24 }
 0x107   :  { %v857_v17 = vpack.c.bf16 %v821_v10, %v819_v14  ;;  %v286_v34 = vmul.f32 %v2393_v26, %v202_v59  ;;  %v287_v35 = vmul.f32 %v2378_v19, %v202_v59  ;;  %v464_v10 = vmul.f32 %v2371_v16, %v354_v9 }
 0x108   :  { %1229 = vmatprep.mubr.bf16.mxu1 %v858_v1  ;;  %vm664_vm0 = vcmp.gt.f32.partialorder %v600_v42, 0.0  ;;  %v728_v46 = vmul.f32 0.2, %v600_v42  ;;  %v727_v47 = vmul.f32 0.2, %v599_v36  ;;  %vm663_vm1 = vcmp.gt.f32.partialorder %v599_v36, 0.0 }
 0x109   :  { %v207_v23 = vpop.permute.xlu1 %206  ;;  %1230 = vmatmul.mubr.bf16.gmra.mrb[20].mxu1 %v857_v17  ;;  %v463_v24 = vmul.f32 %v2384_v22, %v354_v9 }
 0x10a   :  { %v288_v29 = vmul.f32 %v2393_v26, %v207_v23  ;;  %v289_v49 = vmul.f32 %v2378_v19, %v207_v23  ;;  %v792_v62 = vsel %vm664_vm0, %v600_v42, %v728_v46  ;;  %v791_v58 = vsel %vm663_vm1, %v599_v36, %v727_v47 }
 0x10c   :  { %v557_v40 = vadd.f32 %v493_v8, %v288_v29  ;;  %v558_v20 = vadd.f32 %v494_v30, %v289_v49  ;;  %v422_v49 = vpop.permute.xlu0 %421 }
 0x10d   :  { %v498_v42 = vmul.f32 %v2371_v16, %v422_v49 }
 0x10e   :  { %v350_v28 = vpop.permute.xlu1 %349  ;;  %v633_v54 = vadd.f32 %v2411_v39, %v557_v40  ;;  %v634_v55 = vadd.f32 %v2399_v32, %v558_v20  ;;  %v260_v20 = vmul.f32 %v2393_v26, %v2422_v52 }
 0x10f   :  { %v461_v0 = vmul.f32 %v2384_v22, %v350_v28  ;;  %v462_v25 = vmul.f32 %v2371_v16, %v350_v28 }
 0x110   :  { %vm698_vm4 = vcmp.gt.f32.partialorder %v634_v55, 0.0  ;;  %v762_v7 = vmul.f32 0.2, %v634_v55  ;;  %v761_v12 = vmul.f32 0.2, %v633_v54  ;;  %vm697_vm7 = vcmp.gt.f32.partialorder %v633_v54, 0.0 }
 0x111   :  { %v525_v31 = vadd.f32 %v461_v0, %v256_v37  ;;  %v526_v43 = vadd.f32 %v462_v25, %v257_v41  ;;  %v497_v41 = vmul.f32 %v2384_v22, %v422_v49 }
 0x112   :  { %v410_v45 = vpop.permute.xlu1 %409  ;;  %v826_v21 = vsel %vm698_vm4, %v634_v55, %v762_v7  ;;  %v825_v4 = vsel %vm697_vm7, %v633_v54, %v761_v12 }
 0x113   :  { %v601_v48 = vadd.f32 %v2411_v39, %v525_v31  ;;  %v602_v44 = vadd.f32 %v2399_v32, %v526_v43  ;;  %v491_v51 = vmul.f32 %v2384_v22, %v410_v45  ;;  %v492_v53 = vmul.f32 %v2371_v16, %v410_v45 }
 0x115   :  { %v555_v57 = vadd.f32 %v491_v51, %v286_v34  ;;  %v556_v56 = vadd.f32 %v492_v53, %v287_v35  ;;  %vm666_vm2 = vcmp.gt.f32.partialorder %v602_v44, 0.0  ;;  %v730_v61 = vmul.f32 0.2, %v602_v44 }
 0x116   :  { %vm665_vm3 = vcmp.gt.f32.partialorder %v601_v48, 0.0  ;;  %v729_v33 = vmul.f32 0.2, %v601_v48  ;;  %v261_v34 = vmul.f32 %v2378_v19, %v2422_v52 }
 0x117   :  { %v631_v63 = vadd.f32 %v2411_v39, %v555_v57  ;;  %v632_v60 = vadd.f32 %v2399_v32, %v556_v56  ;;  %v132_v2 = vpop.permute.xlu1 %131  ;;  %v794_v38 = vsel %vm666_vm2, %v602_v44, %v730_v61 }
 0x118   :  { %v844_v3 = vpack.c.bf16 %v794_v38, %v792_v62  ;;  %v793_v5 = vsel %vm665_vm3, %v601_v48, %v729_v33  ;;  %v259_v27 = vmul.f32 %v2378_v19, %v132_v2  ;;  %v258_v11 = vmul.f32 %v2393_v26, %v132_v2 }
 0x119   :  { %v843_v59 = vpack.c.bf16 %v793_v5, %v791_v58  ;;  %vm696_vm5 = vcmp.gt.f32.partialorder %v632_v60, 0.0  ;;  %v760_v6 = vmul.f32 0.2, %v632_v60  ;;  %vm695_vm6 = vcmp.gt.f32.partialorder %v631_v63, 0.0 }
 0x11a   :  { %1159 = vmatprep.mubr.bf16.mxu0 %v844_v3  ;;  %v759_v50 = vmul.f32 0.2, %v631_v63  ;;  %v528_v15 = vadd.f32 %v464_v10, %v259_v27  ;;  %v527_v30 = vadd.f32 %v463_v24, %v258_v11  ;;  %v1452_v11 = vld [vmem:[%s3297_s5] ss:$2 sm:$0x3] }
 0x11b   :  { %v212_v1 = vpop.permute.xlu1 %211  ;;  %1160 = vmatmul.mubr.bf16.gmra.mrb[24].mxu0 %v843_v59  ;;  %v824_v14 = vsel %vm696_vm5, %v632_v60, %v760_v6  ;;  %v2687_v49 = vrot.slane %v1452_v11, %v2363_v13 }
 0x11c   :  { %v860_v17 = vpack.c.bf16 %v826_v21, %v824_v14  ;;  %v823_v23 = vsel %vm695_vm6, %v631_v63, %v759_v50  ;;  %v604_v28 = vadd.f32 %v2399_v32, %v528_v15  ;;  %v603_v0 = vadd.f32 %v2411_v39, %v527_v30  ;;  %v1971_v21 = vld [vmem:[%s3297_s5 + $0x1] ss:$2 sm:$0x3] }
 0x11d   :  { %v859_v29 = vpack.c.bf16 %v825_v4, %v823_v23  ;;  %v290_v46 = vmul.f32 %v2393_v26, %v212_v1  ;;  %v291_v44 = vmul.f32 %v2378_v19, %v212_v1  ;;  %v895_v1 = vld [vmem:[%s3296_s4] sm:$0x3] }
 0x11e   :  { %1239 = vmatprep.mubr.bf16.mxu1 %v860_v17  ;;  %v732_v45 = vmul.f32 0.2, %v604_v28  ;;  %vm668_vm8 = vcmp.gt.f32.partialorder %v604_v28, 0.0  ;;  %vm667_vm9 = vcmp.gt.f32.partialorder %v603_v0, 0.0  ;;  %v731_v54 = vmul.f32 0.2, %v603_v0 }
 0x11f   :  { %v217_v8 = vpop.permute.xlu1 %216  ;;  %1240 = vmatmul.mubr.bf16.gmra.mrb[24].mxu1 %v859_v29  ;;  %v2670_v14 = vrot.slane %v895_v1, %v2375_v18  ;;  %v2673_v10 = vrot.slane %v895_v1, %v2363_v13  ;;  %v2684_v29 = vrot.slane %v1452_v11, %v2375_v18 }
 0x120   :  { %v293_v36 = vmul.f32 %v2378_v19, %v217_v8  ;;  %v292_v37 = vmul.f32 %v2393_v26, %v217_v8  ;;  %v796_v61 = vsel %vm668_vm8, %v604_v28, %v732_v45  ;;  %v795_v60 = vsel %vm667_vm9, %v603_v0, %v731_v54 }
 0x121   :  { %v2690_v8 = vrot.slane %v1971_v21, %v2375_v18  ;;  %v2694_v28 = vrot.slane %v1971_v21, %v2363_v13 }
 0x122   :  { %v562_v25 = vadd.f32 %v498_v42, %v293_v36  ;;  %v561_v35 = vadd.f32 %v497_v41, %v292_v37 }
 0x124   :  { %v358_v40 = vpop.permute.xlu1 %357  ;;  %v638_v51 = vadd.f32 %v2399_v32, %v562_v25  ;;  %v637_v26 = vadd.f32 %v2411_v39, %v561_v35 }
 0x125   :  { %v465_v31 = vmul.f32 %v2384_v22, %v358_v40  ;;  %v466_v43 = vmul.f32 %v2371_v16, %v358_v40 }
 0x126   :  { %vm702_vm12 = vcmp.gt.f32.partialorder %v638_v51, 0.0  ;;  %v766_v3 = vmul.f32 0.2, %v638_v51  ;;  %vm701_vm13 = vcmp.gt.f32.partialorder %v637_v26, 0.0 }
 0x127   :  { %v529_v47 = vadd.f32 %v465_v31, %v260_v20  ;;  %v530_v48 = vadd.f32 %v466_v43, %v261_v34 }
 0x128   :  { %v418_v53 = vpop.permute.xlu1 %417  ;;  %v830_v12 = vsel %vm702_vm12, %v638_v51, %v766_v3 }
 0x129   :  { %v605_v52 = vadd.f32 %v2411_v39, %v529_v47  ;;  %v606_v55 = vadd.f32 %v2399_v32, %v530_v48  ;;  %v495_v57 = vmul.f32 %v2384_v22, %v418_v53  ;;  %v496_v56 = vmul.f32 %v2371_v16, %v418_v53 }
 0x12a   :  { %v765_v16 = vmul.f32 0.2, %v637_v26 }
 0x12b   :  { %v559_v62 = vadd.f32 %v495_v57, %v290_v46  ;;  %v560_v33 = vadd.f32 %v496_v56, %v291_v44  ;;  %vm670_vm10 = vcmp.gt.f32.partialorder %v606_v55, 0.0  ;;  %v734_v19 = vmul.f32 0.2, %v606_v55 }
 0x12c   :  { %vm669_vm11 = vcmp.gt.f32.partialorder %v605_v52, 0.0  ;;  %v733_v63 = vmul.f32 0.2, %v605_v52  ;;  %v829_v50 = vsel %vm701_vm13, %v637_v26, %v765_v16 }
 0x12d   :  { %v635_v2 = vadd.f32 %v2411_v39, %v559_v62  ;;  %v636_v38 = vadd.f32 %v2399_v32, %v560_v33  ;;  %v798_v58 = vsel %vm670_vm10, %v606_v55, %v734_v19 }
 0x12e   :  { %v846_v22 = vpack.c.bf16 %v798_v58, %v796_v61  ;;  %v797_v5 = vsel %vm669_vm11, %v605_v52, %v733_v63 }
 0x12f   :  { %v845_v7 = vpack.c.bf16 %v797_v5, %v795_v60  ;;  %vm700_vm14 = vcmp.gt.f32.partialorder %v636_v38, 0.0  ;;  %v764_v9 = vmul.f32 0.2, %v636_v38  ;;  %vm699_vm15 = vcmp.gt.f32.partialorder %v635_v2, 0.0 }
 0x130   :  { %1169 = vmatprep.mubr.bf16.mxu0 %v846_v22  ;;  %v763_v59 = vmul.f32 0.2, %v635_v2 }
 0x131   :  { %1170 = vmatmul.mubr.bf16.gmra.mrb[28].mxu0 %v845_v7  ;;  %v828_v6 = vsel %vm700_vm14, %v636_v38, %v764_v9 }
 0x132   :  { %v862_v27 = vpack.c.bf16 %v830_v12, %v828_v6  ;;  %v827_v39 = vsel %vm699_vm15, %v635_v2, %v763_v59 }
 0x133   :  { %v861_v32 = vpack.c.bf16 %v829_v50, %v827_v39 }
 0x134   :  { %1249 = vmatprep.mubr.bf16.mxu1 %v862_v27 }
 0x135   :  { %1250 = vmatmul.mubr.bf16.gmra.mrb[28].mxu1 %v861_v32 }
 0x187   :  { %v1101_v17 = vpop.f32.mrb[0].mxu0 }
 0x188   :  { %v1102_v23 = vadd.f32 %v1101_v17, %v2670_v14  ;;  %v1103_v4 = vpop.f32.mrb[1].mxu0 }
 0x189   :  { %v1104_v24 = vadd.f32 %v1103_v4, %v2673_v10  ;;  %v1105_v15 = vpop.f32.mrb[2].mxu0 }
 0x18a   :  { %vm1260_vm0 = vcmp.gt.f32.partialorder %v1102_v23, 0.0  ;;  %v1324_v30 = vmul.f32 0.2, %v1102_v23  ;;  %v1106_v36 = vadd.f32 %v1105_v15, %v2670_v14  ;;  %v1107_v42 = vpop.f32.mrb[3].mxu0 }
 0x18b   :  { %vm1261_vm1 = vcmp.gt.f32.partialorder %v1104_v24, 0.0  ;;  %v1325_v37 = vmul.f32 0.2, %v1104_v24  ;;  %v1108_v41 = vadd.f32 %v1107_v42, %v2673_v10 }
 0x18c   :  { %vm1262_vm2 = vcmp.gt.f32.partialorder %v1106_v36, 0.0  ;;  %v1326_v0 = vmul.f32 0.2, %v1106_v36  ;;  %v1388_v25 = vsel %vm1260_vm0, %v1102_v23, %v1324_v30 }
 0x18d   :  { %vm1263_vm3 = vcmp.gt.f32.partialorder %v1108_v41, 0.0  ;;  %v1327_v40 = vmul.f32 0.2, %v1108_v41  ;;  %v1389_v20 = vsel %vm1261_vm1, %v1104_v24, %v1325_v37  ;;  %v1464_v18 = vmul.f32 %v2684_v29, %v1388_v25 }
 0x18e   :  { %v1181_v34 = vpop.f32.mrb[0].mxu1  ;;  %v1465_v31 = vmul.f32 %v2687_v49, %v1389_v20  ;;  %v1637_v43 = vmul.f32 %v2690_v8, %v1388_v25  ;;  %v1638_v13 = vmul.f32 %v2694_v28, %v1389_v20  ;;  %v1390_v35 = vsel %vm1262_vm2, %v1106_v36, %v1326_v0 }
 0x18f   :  { %v1182_v45 = vadd.f32 %v1181_v34, %v2670_v14  ;;  %v1183_v46 = vpop.f32.mrb[1].mxu1  ;;  %v1391_v47 = vsel %vm1263_vm3, %v1108_v41, %v1327_v40  ;;  %v1639_v48 = vmul.f32 %v2690_v8, %v1390_v35  ;;  %v2707_v55 = vmul.f32 %v2684_v29, %v1390_v35 }
 0x190   :  { %v1184_v44 = vadd.f32 %v1183_v46, %v2673_v10  ;;  %v1185_v51 = vpop.f32.mrb[2].mxu1  ;;  %v1111_v53 = vpop.f32.mrb[4].mxu0  ;;  %v1528_v54 = vadd.f32 %v1465_v31, %v1464_v18  ;;  %v2704_v52 = vadd.f32 %v1638_v13, %v1637_v43  ;;  %v1640_v58 = vmul.f32 %v2694_v28, %v1391_v47 }
 0x191   :  { %vm1292_vm4 = vcmp.gt.f32.partialorder %v1182_v45, 0.0  ;;  %v1356_v57 = vmul.f32 0.2, %v1182_v45  ;;  %v1186_v56 = vadd.f32 %v1185_v51, %v2670_v14  ;;  %v1187_v26 = vpop.f32.mrb[3].mxu1  ;;  %v2711_v61 = vadd.f32 %v1111_v53, %v2670_v14  ;;  %v1113_v62 = vpop.f32.mrb[5].mxu0 }
 0x192   :  { %vm1293_vm5 = vcmp.gt.f32.partialorder %v1184_v44, 0.0  ;;  %v1357_v33 = vmul.f32 0.2, %v1184_v44  ;;  %v1188_v19 = vadd.f32 %v1187_v26, %v2673_v10  ;;  %v2715_v63 = vadd.f32 %v1113_v62, %v2673_v10  ;;  %v1115_v60 = vpop.f32.mrb[6].mxu0  ;;  %1529 = vadd.xlane.f32.xlu1 %v1528_v54 }
 0x193   :  { %vm1294_vm6 = vcmp.gt.f32.partialorder %v1186_v56, 0.0  ;;  %v1358_v2 = vmul.f32 0.2, %v1186_v56  ;;  %v1328_v38 = vmul.f32 0.2, %v2711_v61  ;;  %vm1264_vm8 = vcmp.gt.f32.partialorder %v2711_v61, 0.0 }
 0x194   :  { %vm1295_vm7 = vcmp.gt.f32.partialorder %v1188_v19, 0.0  ;;  %v1359_v3 = vmul.f32 0.2, %v1188_v19  ;;  %vm1265_vm9 = vcmp.gt.f32.partialorder %v2715_v63, 0.0  ;;  %v1329_v22 = vmul.f32 0.2, %v2715_v63 }
 0x195   :  { %v1116_v5 = vadd.f32 %v1115_v60, %v2670_v14  ;;  %v1117_v16 = vpop.f32.mrb[7].mxu0  ;;  %v1420_v7 = vsel %vm1292_vm4, %v1182_v45, %v1356_v57  ;;  %v1421_v9 = vsel %vm1293_vm5, %v1184_v44, %v1357_v33  ;;  %v1422_v59 = vsel %vm1294_vm6, %v1186_v56, %v1358_v2 }
 0x196   :  { %v1118_v6 = vadd.f32 %v1117_v16, %v2673_v10  ;;  %v1496_v12 = vmul.f32 %v2684_v29, %v1420_v7  ;;  %v1497_v27 = vmul.f32 %v2687_v49, %v1421_v9  ;;  %v1423_v39 = vsel %vm1295_vm7, %v1188_v19, %v1359_v3 }
 0x197   :  { %vm1266_vm10 = vcmp.gt.f32.partialorder %v1116_v5, 0.0  ;;  %v1330_v50 = vmul.f32 0.2, %v1116_v5  ;;  %v1498_v32 = vmul.f32 %v2684_v29, %v1422_v59  ;;  %v1499_v1 = vmul.f32 %v2687_v49, %v1423_v39  ;;  %v1191_v21 = vpop.f32.mrb[4].mxu1 }
 0x198   :  { %vm1267_vm11 = vcmp.gt.f32.partialorder %v1118_v6, 0.0  ;;  %v1331_v11 = vmul.f32 0.2, %v1118_v6  ;;  %v1576_v17 = vadd.f32 %v1497_v27, %v1496_v12  ;;  %v1704_v23 = vadd.f32 %v1640_v58, %v1639_v48  ;;  %v1193_v24 = vpop.f32.mrb[5].mxu1 }
 0x199   :  { %v1192_v4 = vadd.f32 %v1191_v21, %v2670_v14  ;;  %v1579_v15 = vadd.f32 %v1499_v1, %v1498_v32  ;;  %v1669_v30 = vmul.f32 %v2690_v8, %v1420_v7  ;;  %v1670_v36 = vmul.f32 %v2694_v28, %v1421_v9  ;;  %v1195_v37 = vpop.f32.mrb[6].mxu1 }
 0x19a   :  { %v1194_v42 = vadd.f32 %v1193_v24, %v2673_v10  ;;  %1577 = vadd.xlane.f32.xlu0 %v1576_v17  ;;  %v1671_v41 = vmul.f32 %v2690_v8, %v1422_v59  ;;  %v1672_v0 = vmul.f32 %v2694_v28, %v1423_v39  ;;  %v1467_v25 = vmul.f32 %v2687_v49, %v1391_v47  ;;  %v1197_v18 = vpop.f32.mrb[7].mxu1 }
 0x19b   :  { %vm1296_vm12 = vcmp.gt.f32.partialorder %v1192_v4, 0.0  ;;  %v1360_v40 = vmul.f32 0.2, %v1192_v4  ;;  %v1196_v20 = vadd.f32 %v1195_v37, %v2670_v14  ;;  %1580 = vadd.xlane.f32.xlu1 %v1579_v15  ;;  %v1749_v34 = vadd.f32 %v1670_v36, %v1669_v30 }
 0x19c   :  { %vm1297_vm13 = vcmp.gt.f32.partialorder %v1194_v42, 0.0  ;;  %v1361_v31 = vmul.f32 0.2, %v1194_v42  ;;  %v1198_v43 = vadd.f32 %v1197_v18, %v2673_v10  ;;  %v1752_v13 = vadd.f32 %v1672_v0, %v1671_v41 }
 0x19d   :  { %vm1298_vm14 = vcmp.gt.f32.partialorder %v1196_v20, 0.0  ;;  %v1362_v35 = vmul.f32 0.2, %v1196_v20  ;;  %v1531_v45 = vadd.f32 %v1467_v25, %v2707_v55  ;;  %v1394_v46 = vsel %vm1266_vm10, %v1116_v5, %v1330_v50 }
 0x19e   :  { %vm1299_vm15 = vcmp.gt.f32.partialorder %v1198_v43, 0.0  ;;  %v1363_v47 = vmul.f32 0.2, %v1198_v43  ;;  %1702 = vadd.xlane.f32.xlu0 %v2704_v52  ;;  %v1395_v48 = vsel %vm1267_vm11, %v1118_v6, %v1331_v11  ;;  %v1470_v44 = vmul.f32 %v2684_v29, %v1394_v46  ;;  %v1121_v51 = vpop.f32.mrb[8].mxu0 }
 0x19f   :  { %1705 = vadd.xlane.f32.xlu1 %v1704_v23  ;;  %v1471_v53 = vmul.f32 %v2687_v49, %v1395_v48  ;;  %v1392_v54 = vsel %vm1264_vm8, %v2711_v61, %v1328_v38  ;;  %v1393_v55 = vsel %vm1265_vm9, %v2715_v63, %v1329_v22  ;;  %v1426_v57 = vsel %vm1298_vm14, %v1196_v20, %v1362_v35  ;;  %v1123_v52 = vpop.f32.mrb[9].mxu0 }
 0x1a0   :  { %v2752_v56 = vadd.f32 %v1121_v51, %v2670_v14  ;;  %v1468_v26 = vmul.f32 %v2684_v29, %v1392_v54  ;;  %v1469_v62 = vmul.f32 %v2687_v49, %v1393_v55  ;;  %v1427_v33 = vsel %vm1299_vm15, %v1198_v43, %v1363_v47  ;;  %v1125_v60 = vpop.f32.mrb[10].mxu0 }
 0x1a1   :  { %v2757_v19 = vadd.f32 %v1123_v52, %v2673_v10  ;;  %v1537_v2 = vadd.f32 %v1471_v53, %v1470_v44  ;;  %v1502_v61 = vmul.f32 %v2684_v29, %v1426_v57  ;;  %v1503_v38 = vmul.f32 %v2687_v49, %v1427_v33  ;;  %v1127_v58 = vpop.f32.mrb[11].mxu0 }
 0x1a2   :  { %vm1268_vm0 = vcmp.gt.f32.partialorder %v2752_v56, 0.0  ;;  %v1126_v63 = vadd.f32 %v1125_v60, %v2670_v14  ;;  %1750 = vadd.xlane.f32.xlu0 %v1749_v34  ;;  %v1534_v3 = vadd.f32 %v1469_v62, %v1468_v26  ;;  %v1332_v22 = vmul.f32 0.2, %v2752_v56 }
 0x1a3   :  { %vm1269_vm1 = vcmp.gt.f32.partialorder %v2757_v19, 0.0  ;;  %v1128_v5 = vadd.f32 %v1127_v58, %v2673_v10  ;;  %1753 = vadd.xlane.f32.xlu1 %v1752_v13  ;;  %v1585_v16 = vadd.f32 %v1503_v38, %v1502_v61  ;;  %v1333_v7 = vmul.f32 0.2, %v2757_v19  ;;  %v1201_v9 = vpop.f32.mrb[8].mxu1 }
 0x1a4   :  { %vm1270_vm2 = vcmp.gt.f32.partialorder %v1126_v63, 0.0  ;;  %v1424_v59 = vsel %vm1296_vm12, %v1192_v4, %v1360_v40  ;;  %v1425_v6 = vsel %vm1297_vm13, %v1194_v42, %v1361_v31  ;;  %v1334_v12 = vmul.f32 0.2, %v1126_v63  ;;  %v1203_v39 = vpop.f32.mrb[9].mxu1 }
 0x1a5   :  { %vm1271_vm3 = vcmp.gt.f32.partialorder %v1128_v5, 0.0  ;;  %v2770_v27 = vadd.f32 %v1201_v9, %v2670_v14  ;;  %v1500_v50 = vmul.f32 %v2684_v29, %v1424_v59  ;;  %v2774_v32 = vadd.f32 %v1203_v39, %v2673_v10  ;;  %v1205_v1 = vpop.f32.mrb[10].mxu1 }
 0x1a6   :  { %1532 = vadd.xlane.f32.xlu0 %v1531_v45  ;;  %v1501_v11 = vmul.f32 %v2687_v49, %v1425_v6  ;;  %v1643_v21 = vmul.f32 %v2690_v8, %v1394_v46  ;;  %v1644_v17 = vmul.f32 %v2694_v28, %v1395_v48  ;;  %v1335_v23 = vmul.f32 0.2, %v1128_v5  ;;  %v1207_v15 = vpop.f32.mrb[11].mxu1 }
 0x1a7   :  { %v2780_v4 = vmul.f32 0.2, %v2770_v27  ;;  %v1206_v24 = vadd.f32 %v1205_v1, %v2670_v14  ;;  %1538 = vadd.xlane.f32.xlu1 %v1537_v2  ;;  %v1641_v30 = vmul.f32 %v2690_v8, %v1392_v54  ;;  %vm1300_vm4 = vcmp.gt.f32.partialorder %v2770_v27, 0.0 }
 0x1a8   :  { %vm1301_vm5 = vcmp.gt.f32.partialorder %v2774_v32, 0.0  ;;  %v1365_v36 = vmul.f32 0.2, %v2774_v32  ;;  %v1208_v42 = vadd.f32 %v1207_v15, %v2673_v10  ;;  %v1582_v37 = vadd.f32 %v1501_v11, %v1500_v50 }
 0x1a9   :  { %vm1302_vm6 = vcmp.gt.f32.partialorder %v1206_v24, 0.0  ;;  %v1366_v41 = vmul.f32 0.2, %v1206_v24  ;;  %v1710_v0 = vadd.f32 %v1644_v17, %v1643_v21  ;;  %v1642_v25 = vmul.f32 %v2694_v28, %v1393_v55 }
 0x1aa   :  { %vm1303_vm7 = vcmp.gt.f32.partialorder %v1208_v42, 0.0  ;;  %v1367_v40 = vmul.f32 0.2, %v1208_v42  ;;  %1535 = vadd.xlane.f32.xlu0 %v1534_v3  ;;  %v1675_v20 = vmul.f32 %v2690_v8, %v1426_v57  ;;  %v1676_v18 = vmul.f32 %v2694_v28, %v1427_v33 }
 0x1ab   :  { %1586 = vadd.xlane.f32.xlu1 %v1585_v16  ;;  %v1707_v34 = vadd.f32 %v1642_v25, %v1641_v30  ;;  %v1673_v31 = vmul.f32 %v2690_v8, %v1424_v59  ;;  %v1674_v43 = vmul.f32 %v2694_v28, %v1425_v6  ;;  %v1398_v13 = vsel %vm1270_vm2, %v1126_v63, %v1334_v12 }
 0x1ac   :  { %v1758_v35 = vadd.f32 %v1676_v18, %v1675_v20  ;;  %v1399_v45 = vsel %vm1271_vm3, %v1128_v5, %v1335_v23  ;;  %v1474_v46 = vmul.f32 %v2684_v29, %v1398_v13  ;;  %v1647_v47 = vmul.f32 %v2690_v8, %v1398_v13  ;;  %v1131_v54 = vpop.f32.mrb[12].mxu0 }
 0x1ad   :  { %v1755_v48 = vadd.f32 %v1674_v43, %v1673_v31  ;;  %v1475_v44 = vmul.f32 %v2687_v49, %v1399_v45  ;;  %v1648_v51 = vmul.f32 %v2694_v28, %v1399_v45  ;;  %v1396_v53 = vsel %vm1268_vm0, %v2752_v56, %v1332_v22  ;;  %v1133_v33 = vpop.f32.mrb[13].mxu0 }
 0x1ae   :  { %1583 = vadd.xlane.f32.xlu0 %v1582_v37  ;;  %v1397_v55 = vsel %vm1269_vm1, %v2757_v19, %v1333_v7  ;;  %v1472_v57 = vmul.f32 %v2684_v29, %v1396_v53  ;;  %v1430_v52 = vsel %vm1302_vm6, %v1206_v24, %v1366_v41  ;;  %v1431_v26 = vsel %vm1303_vm7, %v1208_v42, %v1367_v40  ;;  %v1135_v38 = vpop.f32.mrb[14].mxu0 }
 0x1af   :  { %1711 = vadd.xlane.f32.xlu1 %v1710_v0  ;;  %v2809_v62 = vadd.f32 %v1131_v54, %v2670_v14  ;;  %v1543_v60 = vadd.f32 %v1475_v44, %v1474_v46  ;;  %v1473_v56 = vmul.f32 %v2687_v49, %v1397_v55  ;;  %v1506_v2 = vmul.f32 %v2684_v29, %v1430_v52  ;;  %v1137_v5 = vpop.f32.mrb[15].mxu0 }
 0x1b0   :  { %v1134_v61 = vadd.f32 %v1133_v33, %v2673_v10  ;;  %v1507_v19 = vmul.f32 %v2687_v49, %v1431_v26  ;;  %v1679_v63 = vmul.f32 %v2690_v8, %v1430_v52  ;;  %v1680_v58 = vmul.f32 %v2694_v28, %v1431_v26  ;;  %v1211_v12 = vpop.f32.mrb[12].mxu1 }
 0x1b1   :  { %vm1272_vm8 = vcmp.gt.f32.partialorder %v2809_v62, 0.0  ;;  %v1336_v3 = vmul.f32 0.2, %v2809_v62  ;;  %v1136_v22 = vadd.f32 %v1135_v38, %v2670_v14  ;;  %v1540_v16 = vadd.f32 %v1473_v56, %v1472_v57  ;;  %v1213_v21 = vpop.f32.mrb[13].mxu1 }
 0x1b2   :  { %1708 = vadd.xlane.f32.xlu0 %v1707_v34  ;;  %vm1273_vm9 = vcmp.gt.f32.partialorder %v1134_v61, 0.0  ;;  %v1337_v7 = vmul.f32 0.2, %v1134_v61  ;;  %v1138_v9 = vadd.f32 %v1137_v5, %v2673_v10  ;;  %v1591_v59 = vadd.f32 %v1507_v19, %v1506_v2  ;;  %v1215_v15 = vpop.f32.mrb[14].mxu1 }
 0x1b3   :  { %vm1274_vm10 = vcmp.gt.f32.partialorder %v1136_v22, 0.0  ;;  %v1338_v6 = vmul.f32 0.2, %v1136_v22  ;;  %1759 = vadd.xlane.f32.xlu1 %v1758_v35  ;;  %v1428_v39 = vsel %vm1300_vm4, %v2770_v27, %v2780_v4  ;;  %v1429_v50 = vsel %vm1301_vm5, %v2774_v32, %v1365_v36  ;;  %v1217_v4 = vpop.f32.mrb[15].mxu1 }
 0x1b4   :  { %vm1275_vm11 = vcmp.gt.f32.partialorder %v1138_v9, 0.0  ;;  %v1339_v1 = vmul.f32 0.2, %v1138_v9  ;;  %v1212_v11 = vadd.f32 %v1211_v12, %v2670_v14  ;;  %v1504_v17 = vmul.f32 %v2684_v29, %v1428_v39 }
 0x1b5   :  { %v1402_v23 = vsel %vm1274_vm10, %v1136_v22, %v1338_v6  ;;  %v1214_v24 = vadd.f32 %v1213_v21, %v2673_v10  ;;  %v1505_v30 = vmul.f32 %v2687_v49, %v1429_v50  ;;  %v1716_v42 = vadd.f32 %v1648_v51, %v1647_v47 }
 0x1b6   :  { %v1403_v37 = vsel %vm1275_vm11, %v1138_v9, %v1339_v1  ;;  %vm1304_vm12 = vcmp.gt.f32.partialorder %v1212_v11, 0.0  ;;  %v1368_v27 = vmul.f32 0.2, %v1212_v11  ;;  %1756 = vadd.xlane.f32.xlu0 %v1755_v48  ;;  %v1216_v32 = vadd.f32 %v1215_v15, %v2670_v14 }
 0x1b7   :  { %vm1305_vm13 = vcmp.gt.f32.partialorder %v1214_v24, 0.0  ;;  %v1369_v36 = vmul.f32 0.2, %v1214_v24  ;;  %1544 = vadd.xlane.f32.xlu1 %v1543_v60  ;;  %v1218_v41 = vadd.f32 %v1217_v4, %v2673_v10  ;;  %v1588_v0 = vadd.f32 %v1505_v30, %v1504_v17 }
 0x1b8   :  { %vm1306_vm14 = vcmp.gt.f32.partialorder %v1216_v32, 0.0  ;;  %v1370_v25 = vmul.f32 0.2, %v1216_v32  ;;  %v1645_v40 = vmul.f32 %v2690_v8, %v1396_v53  ;;  %v1646_v20 = vmul.f32 %v2694_v28, %v1397_v55 }
 0x1b9   :  { %vm1307_vm15 = vcmp.gt.f32.partialorder %v1218_v41, 0.0  ;;  %v1371_v18 = vmul.f32 0.2, %v1218_v41  ;;  %v1764_v34 = vadd.f32 %v1680_v58, %v1679_v63  ;;  %v1677_v31 = vmul.f32 %v2690_v8, %v1428_v39 }
 0x1ba   :  { %v1434_v43 = vsel %vm1306_vm14, %v1216_v32, %v1370_v25  ;;  %1541 = vadd.xlane.f32.xlu0 %v1540_v16  ;;  %v1713_v13 = vadd.f32 %v1646_v20, %v1645_v40  ;;  %v1678_v35 = vmul.f32 %v2694_v28, %v1429_v50  ;;  %v1478_v45 = vmul.f32 %v2684_v29, %v1402_v23 }
 0x1bb   :  { %v1435_v46 = vsel %vm1307_vm15, %v1218_v41, %v1371_v18  ;;  %1592 = vadd.xlane.f32.xlu1 %v1591_v59  ;;  %v1479_v47 = vmul.f32 %v2687_v49, %v1403_v37  ;;  %v1400_v48 = vsel %vm1272_vm8, %v2809_v62, %v1336_v3  ;;  %v1401_v44 = vsel %vm1273_vm9, %v1134_v61, %v1337_v7 }
 0x1bc   :  { %v1761_v51 = vadd.f32 %v1678_v35, %v1677_v31  ;;  %v1476_v53 = vmul.f32 %v2684_v29, %v1400_v48  ;;  %v1477_v54 = vmul.f32 %v2687_v49, %v1401_v44  ;;  %v1510_v55 = vmul.f32 %v2684_v29, %v1434_v43 }
 0x1bd   :  { %v1549_v57 = vadd.f32 %v1479_v47, %v1478_v45  ;;  %v1511_v52 = vmul.f32 %v2687_v49, %v1435_v46  ;;  %v1432_v26 = vsel %vm1304_vm12, %v1212_v11, %v1368_v27  ;;  %v1433_v33 = vsel %vm1305_vm13, %v1214_v24, %v1369_v36 }
 0x1be   :  { %1589 = vadd.xlane.f32.xlu0 %v1588_v0  ;;  %v1546_v60 = vadd.f32 %v1477_v54, %v1476_v53  ;;  %v1508_v62 = vmul.f32 %v2684_v29, %v1432_v26  ;;  %v1509_v56 = vmul.f32 %v2687_v49, %v1433_v33  ;;  %v1651_v2 = vmul.f32 %v2690_v8, %v1402_v23 }
 0x1bf   :  { %1717 = vadd.xlane.f32.xlu1 %v1716_v42  ;;  %v1597_v61 = vadd.f32 %v1511_v52, %v1510_v55  ;;  %v1652_v38 = vmul.f32 %v2694_v28, %v1403_v37  ;;  %v1649_v19 = vmul.f32 %v2690_v8, %v1400_v48  ;;  %v1650_v63 = vmul.f32 %v2694_v28, %v1401_v44 }
 0x1c0   :  { %v1594_v58 = vadd.f32 %v1509_v56, %v1508_v62  ;;  %v1683_v3 = vmul.f32 %v2690_v8, %v1434_v43  ;;  %v1684_v22 = vmul.f32 %v2694_v28, %v1435_v46  ;;  %v1681_v5 = vmul.f32 %v2690_v8, %v1432_v26 }
 0x1c1   :  { %v1722_v16 = vadd.f32 %v1652_v38, %v1651_v2  ;;  %v2859_v7 = vadd.f32 %v1650_v63, %v1649_v19  ;;  %v1682_v9 = vmul.f32 %v2694_v28, %v1433_v33 }
 0x1c2   :  { %1714 = vadd.xlane.f32.xlu0 %v1713_v13  ;;  %v2862_v59 = vadd.f32 %v1684_v22, %v1683_v3  ;;  %v1141_v6 = vpop.f32.mrb[16].mxu0 }
 0x1c3   :  { %1765 = vadd.xlane.f32.xlu1 %v1764_v34  ;;  %v2864_v12 = vadd.f32 %v1682_v9, %v1681_v5  ;;  %v1142_v39 = vadd.f32 %v1141_v6, %v2670_v14  ;;  %v1143_v50 = vpop.f32.mrb[17].mxu0 }
 0x1c4   :  { %v1144_v1 = vadd.f32 %v1143_v50, %v2673_v10  ;;  %v1145_v11 = vpop.f32.mrb[18].mxu0 }
 0x1c5   :  { %vm1276_vm0 = vcmp.gt.f32.partialorder %v1142_v39, 0.0  ;;  %v1340_v21 = vmul.f32 0.2, %v1142_v39  ;;  %v1146_v17 = vadd.f32 %v1145_v11, %v2670_v14  ;;  %v1147_v23 = vpop.f32.mrb[19].mxu0 }
 0x1c6   :  { %1762 = vadd.xlane.f32.xlu0 %v1761_v51  ;;  %vm1277_vm1 = vcmp.gt.f32.partialorder %v1144_v1, 0.0  ;;  %v1341_v24 = vmul.f32 0.2, %v1144_v1  ;;  %v1148_v15 = vadd.f32 %v1147_v23, %v2673_v10  ;;  %v1221_v42 = vpop.f32.mrb[16].mxu1 }
 0x1c7   :  { %1550 = vadd.xlane.f32.xlu1 %v1549_v57  ;;  %vm1278_vm2 = vcmp.gt.f32.partialorder %v1146_v17, 0.0  ;;  %v1342_v30 = vmul.f32 0.2, %v1146_v17  ;;  %v1404_v37 = vsel %vm1276_vm0, %v1142_v39, %v1340_v21  ;;  %v1222_v32 = vadd.f32 %v1221_v42, %v2670_v14  ;;  %v1223_v4 = vpop.f32.mrb[17].mxu1 }
 0x1c8   :  { %vm1279_vm3 = vcmp.gt.f32.partialorder %v1148_v15, 0.0  ;;  %v1343_v27 = vmul.f32 0.2, %v1148_v15  ;;  %v1405_v36 = vsel %vm1277_vm1, %v1144_v1, %v1341_v24  ;;  %v1224_v0 = vadd.f32 %v1223_v4, %v2673_v10  ;;  %v1225_v25 = vpop.f32.mrb[18].mxu1 }
 0x1c9   :  { %v1406_v41 = vsel %vm1278_vm2, %v1146_v17, %v1342_v30  ;;  %v1480_v40 = vmul.f32 %v2684_v29, %v1404_v37  ;;  %v1481_v20 = vmul.f32 %v2687_v49, %v1405_v36  ;;  %vm1308_vm4 = vcmp.gt.f32.partialorder %v1222_v32, 0.0  ;;  %v1227_v43 = vpop.f32.mrb[19].mxu1 }
 0x1ca   :  { %1547 = vadd.xlane.f32.xlu0 %v1546_v60  ;;  %v1407_v18 = vsel %vm1279_vm3, %v1148_v15, %v1343_v27  ;;  %v1372_v34 = vmul.f32 0.2, %v1222_v32  ;;  %v1226_v31 = vadd.f32 %v1225_v25, %v2670_v14  ;;  %vm1309_vm5 = vcmp.gt.f32.partialorder %v1224_v0, 0.0 }
 0x1cb   :  { %1598 = vadd.xlane.f32.xlu1 %v1597_v61  ;;  %v1373_v13 = vmul.f32 0.2, %v1224_v0  ;;  %v1228_v35 = vadd.f32 %v1227_v43, %v2673_v10  ;;  %v1482_v45 = vmul.f32 %v2684_v29, %v1406_v41  ;;  %v1483_v47 = vmul.f32 %v2687_v49, %v1407_v18 }
 0x1cc   :  { %vm1310_vm6 = vcmp.gt.f32.partialorder %v1226_v31, 0.0  ;;  %v1374_v46 = vmul.f32 0.2, %v1226_v31  ;;  %v1552_v48 = vadd.f32 %v1481_v20, %v1480_v40  ;;  %v1436_v51 = vsel %vm1308_vm4, %v1222_v32, %v1372_v34 }
 0x1cd   :  { %vm1311_vm7 = vcmp.gt.f32.partialorder %v1228_v35, 0.0  ;;  %v1375_v44 = vmul.f32 0.2, %v1228_v35  ;;  %v1437_v53 = vsel %vm1309_vm5, %v1224_v0, %v1373_v13  ;;  %v1555_v55 = vadd.f32 %v1483_v47, %v1482_v45 }
 0x1ce   :  { %1595 = vadd.xlane.f32.xlu0 %v1594_v58  ;;  %v1438_v54 = vsel %vm1310_vm6, %v1226_v31, %v1374_v46  ;;  %v1512_v57 = vmul.f32 %v2684_v29, %v1436_v51  ;;  %v1513_v52 = vmul.f32 %v2687_v49, %v1437_v53  ;;  %v1655_v60 = vmul.f32 %v2690_v8, %v1406_v41 }
 0x1cf   :  { %1723 = vadd.xlane.f32.xlu1 %v1722_v16  ;;  %v1439_v26 = vsel %vm1311_vm7, %v1228_v35, %v1375_v44  ;;  %v1514_v33 = vmul.f32 %v2684_v29, %v1438_v54  ;;  %v1656_v62 = vmul.f32 %v2694_v28, %v1407_v18  ;;  %v1653_v61 = vmul.f32 %v2690_v8, %v1404_v37 }
 0x1d0   :  { %v1515_v56 = vmul.f32 %v2687_v49, %v1439_v26  ;;  %v1600_v2 = vadd.f32 %v1513_v52, %v1512_v57  ;;  %v1654_v38 = vmul.f32 %v2694_v28, %v1405_v36  ;;  %v1687_v63 = vmul.f32 %v2690_v8, %v1438_v54 }
 0x1d1   :  { %v1728_v19 = vadd.f32 %v1656_v62, %v1655_v60  ;;  %v1688_v58 = vmul.f32 %v2694_v28, %v1439_v26  ;;  %v1685_v3 = vmul.f32 %v2690_v8, %v1436_v51  ;;  %v1686_v16 = vmul.f32 %v2694_v28, %v1437_v53 }
 0x1d2   :  { %1720 = vadd.xlane.f32.xlu0 %v2859_v7  ;;  %v1603_v22 = vadd.f32 %v1515_v56, %v1514_v33  ;;  %v1725_v5 = vadd.f32 %v1654_v38, %v1653_v61 }
 0x1d3   :  { %1771 = vadd.xlane.f32.xlu1 %v2862_v59  ;;  %v1776_v9 = vadd.f32 %v1688_v58, %v1687_v63  ;;  %v1773_v6 = vadd.f32 %v1686_v16, %v1685_v3 }
 0x1d6   :  { %1768 = vadd.xlane.f32.xlu0 %v2864_v12 }
 0x1d7   :  { %1556 = vadd.xlane.f32.xlu1 %v1555_v55 }
 0x1d8   :  { %v1151_v39 = vpop.f32.mrb[20].mxu0 }
 0x1d9   :  { %v1152_v7 = vadd.f32 %v1151_v39, %v2670_v14  ;;  %v1153_v50 = vpop.f32.mrb[21].mxu0 }
 0x1da   :  { %1553 = vadd.xlane.f32.xlu0 %v1552_v48  ;;  %v1154_v1 = vadd.f32 %v1153_v50, %v2673_v10  ;;  %v1155_v11 = vpop.f32.mrb[22].mxu0 }
 0x1db   :  { %1604 = vadd.xlane.f32.xlu1 %v1603_v22  ;;  %vm1280_vm8 = vcmp.gt.f32.partialorder %v1152_v7, 0.0  ;;  %v1344_v59 = vmul.f32 0.2, %v1152_v7  ;;  %v1156_v21 = vadd.f32 %v1155_v11, %v2670_v14  ;;  %v1157_v17 = vpop.f32.mrb[23].mxu0 }
 0x1dc   :  { %vm1281_vm9 = vcmp.gt.f32.partialorder %v1154_v1, 0.0  ;;  %v1345_v23 = vmul.f32 0.2, %v1154_v1  ;;  %v1158_v24 = vadd.f32 %v1157_v17, %v2673_v10  ;;  %v1231_v15 = vpop.f32.mrb[20].mxu1 }
 0x1dd   :  { %vm1282_vm10 = vcmp.gt.f32.partialorder %v1156_v21, 0.0  ;;  %v1346_v12 = vmul.f32 0.2, %v1156_v21  ;;  %v1408_v30 = vsel %vm1280_vm8, %v1152_v7, %v1344_v59  ;;  %v1232_v37 = vadd.f32 %v1231_v15, %v2670_v14  ;;  %v1233_v27 = vpop.f32.mrb[21].mxu1 }
 0x1de   :  { %1601 = vadd.xlane.f32.xlu0 %v1600_v2  ;;  %vm1283_vm11 = vcmp.gt.f32.partialorder %v1158_v24, 0.0  ;;  %v1347_v42 = vmul.f32 0.2, %v1158_v24  ;;  %v1409_v32 = vsel %vm1281_vm9, %v1154_v1, %v1345_v23  ;;  %v1234_v36 = vadd.f32 %v1233_v27, %v2673_v10  ;;  %v1235_v41 = vpop.f32.mrb[22].mxu1 }
 0x1df   :  { %1729 = vadd.xlane.f32.xlu1 %v1728_v19  ;;  %v1410_v4 = vsel %vm1282_vm10, %v1156_v21, %v1346_v12  ;;  %v1484_v0 = vmul.f32 %v2684_v29, %v1408_v30  ;;  %v1485_v25 = vmul.f32 %v2687_v49, %v1409_v32  ;;  %vm1312_vm12 = vcmp.gt.f32.partialorder %v1232_v37, 0.0  ;;  %v1237_v34 = vpop.f32.mrb[23].mxu1 }
 0x1e0   :  { %v1411_v40 = vsel %vm1283_vm11, %v1158_v24, %v1347_v42  ;;  %v1376_v20 = vmul.f32 0.2, %v1232_v37  ;;  %v1236_v18 = vadd.f32 %v1235_v41, %v2670_v14  ;;  %vm1313_vm13 = vcmp.gt.f32.partialorder %v1234_v36, 0.0 }
 0x1e1   :  { %v1377_v31 = vmul.f32 0.2, %v1234_v36  ;;  %v1238_v43 = vadd.f32 %v1237_v34, %v2673_v10  ;;  %v1486_v13 = vmul.f32 %v2684_v29, %v1410_v4  ;;  %v1487_v45 = vmul.f32 %v2687_v49, %v1411_v40 }
 0x1e2   :  { %1726 = vadd.xlane.f32.xlu0 %v1725_v5  ;;  %vm1314_vm14 = vcmp.gt.f32.partialorder %v1236_v18, 0.0  ;;  %v1378_v35 = vmul.f32 0.2, %v1236_v18  ;;  %v1558_v46 = vadd.f32 %v1485_v25, %v1484_v0  ;;  %v1440_v48 = vsel %vm1312_vm12, %v1232_v37, %v1376_v20 }
 0x1e3   :  { %1777 = vadd.xlane.f32.xlu1 %v1776_v9  ;;  %vm1315_vm15 = vcmp.gt.f32.partialorder %v1238_v43, 0.0  ;;  %v1379_v47 = vmul.f32 0.2, %v1238_v43  ;;  %v1441_v44 = vsel %vm1313_vm13, %v1234_v36, %v1377_v31  ;;  %v1561_v53 = vadd.f32 %v1487_v45, %v1486_v13 }
 0x1e4   :  { %v1442_v51 = vsel %vm1314_vm14, %v1236_v18, %v1378_v35  ;;  %v1516_v54 = vmul.f32 %v2684_v29, %v1440_v48  ;;  %v1517_v55 = vmul.f32 %v2687_v49, %v1441_v44  ;;  %v1659_v26 = vmul.f32 %v2690_v8, %v1410_v4 }
 0x1e5   :  { %v1443_v57 = vsel %vm1315_vm15, %v1238_v43, %v1379_v47  ;;  %v1518_v52 = vmul.f32 %v2684_v29, %v1442_v51  ;;  %v1660_v33 = vmul.f32 %v2694_v28, %v1411_v40  ;;  %v1657_v56 = vmul.f32 %v2690_v8, %v1408_v30 }
 0x1e6   :  { %1774 = vadd.xlane.f32.xlu0 %v1773_v6  ;;  %v1519_v60 = vmul.f32 %v2687_v49, %v1443_v57  ;;  %v1606_v62 = vadd.f32 %v1517_v55, %v1516_v54  ;;  %v1658_v2 = vmul.f32 %v2694_v28, %v1409_v32  ;;  %v1691_v38 = vmul.f32 %v2690_v8, %v1442_v51 }
 0x1e7   :  { %1562 = vadd.xlane.f32.xlu1 %v1561_v53  ;;  %v1734_v61 = vadd.f32 %v1660_v33, %v1659_v26  ;;  %v1692_v19 = vmul.f32 %v2694_v28, %v1443_v57  ;;  %v1689_v63 = vmul.f32 %v2690_v8, %v1440_v48  ;;  %v1690_v22 = vmul.f32 %v2694_v28, %v1441_v44 }
 0x1e8   :  { %v1609_v58 = vadd.f32 %v1519_v60, %v1518_v52  ;;  %v1731_v3 = vadd.f32 %v1658_v2, %v1657_v56 }
 0x1e9   :  { %v1782_v5 = vadd.f32 %v1692_v19, %v1691_v38  ;;  %v1779_v16 = vadd.f32 %v1690_v22, %v1689_v63 }
 0x1ea   :  { %1559 = vadd.xlane.f32.xlu0 %v1558_v46 }
 0x1eb   :  { %1610 = vadd.xlane.f32.xlu1 %v1609_v58 }
 0x1ee   :  { %1607 = vadd.xlane.f32.xlu0 %v1606_v62  ;;  %v1161_v9 = vpop.f32.mrb[24].mxu0 }
 0x1ef   :  { %1735 = vadd.xlane.f32.xlu1 %v1734_v61  ;;  %v1162_v6 = vadd.f32 %v1161_v9, %v2670_v14  ;;  %v1163_v39 = vpop.f32.mrb[25].mxu0 }
 0x1f0   :  { %v1164_v7 = vadd.f32 %v1163_v39, %v2673_v10  ;;  %v1165_v50 = vpop.f32.mrb[26].mxu0 }
 0x1f1   :  { %vm1284_vm0 = vcmp.gt.f32.partialorder %v1162_v6, 0.0  ;;  %v1348_v1 = vmul.f32 0.2, %v1162_v6  ;;  %v1166_v11 = vadd.f32 %v1165_v50, %v2670_v14  ;;  %v1167_v59 = vpop.f32.mrb[27].mxu0 }
 0x1f2   :  { %1732 = vadd.xlane.f32.xlu0 %v1731_v3  ;;  %vm1285_vm1 = vcmp.gt.f32.partialorder %v1164_v7, 0.0  ;;  %v1349_v21 = vmul.f32 0.2, %v1164_v7  ;;  %v1168_v17 = vadd.f32 %v1167_v59, %v2673_v10  ;;  %v1241_v12 = vpop.f32.mrb[24].mxu1 }
 0x1f3   :  { %1783 = vadd.xlane.f32.xlu1 %v1782_v5  ;;  %v1412_v23 = vsel %vm1284_vm0, %v1162_v6, %v1348_v1  ;;  %vm1286_vm2 = vcmp.gt.f32.partialorder %v1166_v11, 0.0  ;;  %v1350_v24 = vmul.f32 0.2, %v1166_v11  ;;  %v1242_v42 = vadd.f32 %v1241_v12, %v2670_v14  ;;  %v1243_v37 = vpop.f32.mrb[25].mxu1 }
 0x1f4   :  { %v1413_v15 = vsel %vm1285_vm1, %v1164_v7, %v1349_v21  ;;  %vm1287_vm3 = vcmp.gt.f32.partialorder %v1168_v17, 0.0  ;;  %v1351_v30 = vmul.f32 0.2, %v1168_v17  ;;  %v1244_v32 = vadd.f32 %v1243_v37, %v2673_v10  ;;  %v1245_v4 = vpop.f32.mrb[26].mxu1 }
 0x1f5   :  { %v1414_v27 = vsel %vm1286_vm2, %v1166_v11, %v1350_v24  ;;  %v1488_v36 = vmul.f32 %v2684_v29, %v1412_v23  ;;  %v1489_v41 = vmul.f32 %v2687_v49, %v1413_v15  ;;  %vm1316_vm4 = vcmp.gt.f32.partialorder %v1242_v42, 0.0  ;;  %v1247_v20 = vpop.f32.mrb[27].mxu1 }
 0x1f6   :  { %1780 = vadd.xlane.f32.xlu0 %v1779_v16  ;;  %v1415_v0 = vsel %vm1287_vm3, %v1168_v17, %v1351_v30  ;;  %v1380_v25 = vmul.f32 0.2, %v1242_v42  ;;  %v1246_v40 = vadd.f32 %v1245_v4, %v2670_v14  ;;  %vm1317_vm5 = vcmp.gt.f32.partialorder %v1244_v32, 0.0 }
 0x1f7   :  { %v1381_v18 = vmul.f32 0.2, %v1244_v32  ;;  %v1248_v34 = vadd.f32 %v1247_v20, %v2673_v10  ;;  %v1564_v31 = vadd.f32 %v1489_v41, %v1488_v36  ;;  %v1490_v35 = vmul.f32 %v2684_v29, %v1414_v27 }
 0x1f8   :  { %v1444_v43 = vsel %vm1316_vm4, %v1242_v42, %v1380_v25  ;;  %vm1318_vm6 = vcmp.gt.f32.partialorder %v1246_v40, 0.0  ;;  %v1382_v13 = vmul.f32 0.2, %v1246_v40  ;;  %v1491_v47 = vmul.f32 %v2687_v49, %v1415_v0 }
 0x1f9   :  { %v1445_v45 = vsel %vm1317_vm5, %v1244_v32, %v1381_v18  ;;  %vm1319_vm7 = vcmp.gt.f32.partialorder %v1248_v34, 0.0  ;;  %v1383_v46 = vmul.f32 0.2, %v1248_v34  ;;  %v1520_v44 = vmul.f32 %v2684_v29, %v1444_v43 }
 0x1fa   :  { %1565 = vadd.xlane.f32.xlu0 %v1564_v31  ;;  %v1446_v48 = vsel %vm1318_vm6, %v1246_v40, %v1382_v13  ;;  %v1521_v51 = vmul.f32 %v2687_v49, %v1445_v45  ;;  %v1661_v53 = vmul.f32 %v2690_v8, %v1412_v23  ;;  %v1567_v55 = vadd.f32 %v1491_v47, %v1490_v35 }
 0x1fb   :  { %v1447_v54 = vsel %vm1319_vm7, %v1248_v34, %v1383_v46  ;;  %v1522_v57 = vmul.f32 %v2684_v29, %v1446_v48  ;;  %v1662_v52 = vmul.f32 %v2694_v28, %v1413_v15  ;;  %v1663_v60 = vmul.f32 %v2690_v8, %v1414_v27 }
 0x1fc   :  { %v1612_v26 = vadd.f32 %v1521_v51, %v1520_v44  ;;  %v1523_v33 = vmul.f32 %v2687_v49, %v1447_v54  ;;  %v1664_v62 = vmul.f32 %v2694_v28, %v1415_v0  ;;  %1568 = vadd.xlane.f32.xlu1 %v1567_v55  ;;  %v1693_v2 = vmul.f32 %v2690_v8, %v1444_v43 }
 0x1fd   :  { %v1737_v56 = vadd.f32 %v1662_v52, %v1661_v53  ;;  %v1694_v61 = vmul.f32 %v2694_v28, %v1445_v45  ;;  %v1695_v38 = vmul.f32 %v2690_v8, %v1446_v48  ;;  %v1696_v58 = vmul.f32 %v2694_v28, %v1447_v54 }
 0x1fe   :  { %1613 = vadd.xlane.f32.xlu0 %v1612_v26  ;;  %v1615_v19 = vadd.f32 %v1523_v33, %v1522_v57  ;;  %v1740_v63 = vadd.f32 %v1664_v62, %v1663_v60  ;;  %vm1836_vm0 = vcmask 7168   ;;  %vm1901_vm1 = vcmask 15368  }
 0x1ff   :  { %v1785_v3 = vadd.f32 %v1694_v61, %v1693_v2  ;;  %v1788_v22 = vadd.f32 %v1696_v58, %v1695_v38  ;;  %v2970_v38 = vld [vmem:[%s3298_s6] ss:$0 sm:$0xff] }
 0x200   :  { %1616 = vadd.xlane.f32.xlu1 %v1615_v19 }
 0x202   :  { %1738 = vadd.xlane.f32.xlu0 %v1737_v56 }
 0x204   :  { %v1171_v5 = vpop.f32.mrb[28].mxu0  ;;  %1741 = vadd.xlane.f32.xlu1 %v1740_v63 }
 0x205   :  { %v1172_v16 = vadd.f32 %v1171_v5, %v2670_v14  ;;  %v1173_v9 = vpop.f32.mrb[29].mxu0 }
 0x206   :  { %1786 = vadd.xlane.f32.xlu0 %v1785_v3  ;;  %v1174_v6 = vadd.f32 %v1173_v9, %v2673_v10  ;;  %v1175_v39 = vpop.f32.mrb[30].mxu0 }
 0x207   :  { %vm1288_vm8 = vcmp.gt.f32.partialorder %v1172_v16, 0.0  ;;  %v1352_v7 = vmul.f32 0.2, %v1172_v16  ;;  %v1176_v50 = vadd.f32 %v1175_v39, %v2670_v14  ;;  %v1177_v1 = vpop.f32.mrb[31].mxu0 }
 0x208   :  { %vm1289_vm9 = vcmp.gt.f32.partialorder %v1174_v6, 0.0  ;;  %v1353_v11 = vmul.f32 0.2, %v1174_v6  ;;  %v1178_v59 = vadd.f32 %v1177_v1, %v2673_v10  ;;  %v1251_v21 = vpop.f32.mrb[28].mxu1  ;;  %1789 = vadd.xlane.f32.xlu1 %v1788_v22 }
 0x209   :  { %v1416_v17 = vsel %vm1288_vm8, %v1172_v16, %v1352_v7  ;;  %vm1290_vm10 = vcmp.gt.f32.partialorder %v1176_v50, 0.0  ;;  %v1354_v23 = vmul.f32 0.2, %v1176_v50  ;;  %v1252_v24 = vadd.f32 %v1251_v21, %v2670_v14  ;;  %v1253_v12 = vpop.f32.mrb[29].mxu1 }
 0x20a   :  { %v1417_v15 = vsel %vm1289_vm9, %v1174_v6, %v1353_v11  ;;  %vm1291_vm11 = vcmp.gt.f32.partialorder %v1178_v59, 0.0  ;;  %v1355_v30 = vmul.f32 0.2, %v1178_v59  ;;  %v1254_v42 = vadd.f32 %v1253_v12, %v2673_v10  ;;  %v1255_v37 = vpop.f32.mrb[30].mxu1 }
 0x20b   :  { %v1418_v27 = vsel %vm1290_vm10, %v1176_v50, %v1354_v23  ;;  %vm1320_vm12 = vcmp.gt.f32.partialorder %v1252_v24, 0.0  ;;  %v1384_v32 = vmul.f32 0.2, %v1252_v24  ;;  %v1256_v4 = vadd.f32 %v1255_v37, %v2670_v14  ;;  %v1257_v36 = vpop.f32.mrb[31].mxu1 }
 0x20c   :  { %v1419_v41 = vsel %vm1291_vm11, %v1178_v59, %v1355_v30  ;;  %vm1321_vm13 = vcmp.gt.f32.partialorder %v1254_v42, 0.0  ;;  %v1385_v0 = vmul.f32 0.2, %v1254_v42  ;;  %v1258_v25 = vadd.f32 %v1257_v36, %v2673_v10 }
 0x20d   :  { %v1448_v40 = vsel %vm1320_vm12, %v1252_v24, %v1384_v32  ;;  %vm1322_vm14 = vcmp.gt.f32.partialorder %v1256_v4, 0.0  ;;  %v1386_v20 = vmul.f32 0.2, %v1256_v4  ;;  %v1492_v18 = vmul.f32 %v2684_v29, %v1416_v17 }
 0x20e   :  { %v1449_v34 = vsel %vm1321_vm13, %v1254_v42, %v1385_v0  ;;  %vm1323_vm15 = vcmp.gt.f32.partialorder %v1258_v25, 0.0  ;;  %v1387_v31 = vmul.f32 0.2, %v1258_v25  ;;  %v1493_v43 = vmul.f32 %v2687_v49, %v1417_v15 }
 0x20f   :  { %v1450_v13 = vsel %vm1322_vm14, %v1256_v4, %v1386_v20  ;;  %v1494_v35 = vmul.f32 %v2684_v29, %v1418_v27  ;;  %v1495_v14 = vmul.f32 %v2687_v49, %v1419_v41  ;;  %v1524_v45 = vmul.f32 %v2684_v29, %v1448_v40 }
 0x210   :  { %v1451_v46 = vsel %vm1323_vm15, %v1258_v25, %v1387_v31  ;;  %v1570_v47 = vadd.f32 %v1493_v43, %v1492_v18  ;;  %v1525_v10 = vmul.f32 %v2687_v49, %v1449_v34  ;;  %v1526_v48 = vmul.f32 %v2684_v29, %v1450_v13 }
 0x211   :  { %v1573_v44 = vadd.f32 %v1495_v14, %v1494_v35  ;;  %v1527_v51 = vmul.f32 %v2687_v49, %v1451_v46  ;;  %v1665_v53 = vmul.f32 %v2690_v8, %v1416_v17  ;;  %v1666_v54 = vmul.f32 %v2694_v28, %v1417_v15 }
 0x212   :  { %1571 = vadd.xlane.f32.xlu0 %v1570_v47  ;;  %v1618_v55 = vadd.f32 %v1525_v10, %v1524_v45  ;;  %v1667_v57 = vmul.f32 %v2690_v8, %v1418_v27  ;;  %v1668_v52 = vmul.f32 %v2694_v28, %v1419_v41  ;;  %v1697_v26 = vmul.f32 %v2690_v8, %v1448_v40 }
 0x213   :  { %1574 = vadd.xlane.f32.xlu1 %v1573_v44  ;;  %v1621_v33 = vadd.f32 %v1527_v51, %v1526_v48  ;;  %v1743_v60 = vadd.f32 %v1666_v54, %v1665_v53  ;;  %v1698_v29 = vmul.f32 %v2694_v28, %v1449_v34  ;;  %v1699_v62 = vmul.f32 %v2690_v8, %v1450_v13 }
 0x214   :  { %v1746_v49 = vadd.f32 %v1668_v52, %v1667_v57  ;;  %v1700_v56 = vmul.f32 %v2694_v28, %v1451_v46 }
 0x215   :  { %v1791_v2 = vadd.f32 %v1698_v29, %v1697_v26 }
 0x216   :  { %1619 = vadd.xlane.f32.xlu0 %v1618_v55  ;;  %v1794_v61 = vadd.f32 %v1700_v56, %v1699_v62 }
 0x217   :  { %1622 = vadd.xlane.f32.xlu1 %v1621_v33 }
 0x21a   :  { %1744 = vadd.xlane.f32.xlu0 %v1743_v60 }
 0x21b   :  { %1747 = vadd.xlane.f32.xlu1 %v1746_v49 }
 0x21e   :  { %1792 = vadd.xlane.f32.xlu0 %v1791_v2 }
 0x21f   :  { %v1530_v19 = vpop.xlane.xlu1 %1529  ;;  %1795 = vadd.xlane.f32.xlu1 %v1794_v61 }
 0x220   :  { %v1804_v8 = vadd.f32 %v2970_v38, %v1530_v19 }
 0x222   :  { %1837 = vst.msk [vmem:[%s3299_s7] sm:$0xff] %vm1836_vm0, %v1804_v8 }
 0x227   :  { %v1578_v28 = vpop.xlane.xlu0 %1577 }
 0x228   :  { %v1820_v63 = vadd.f32 %v2970_v38, %v1578_v28  ;;  %v1581_v58 = vpop.xlane.xlu1 %1580 }
 0x229   :  { %v1821_v3 = vadd.f32 %v2970_v38, %v1581_v58 }
 0x22a   :  { %1853 = vst.msk [vmem:[%s3299_s7 + $0x80] sm:$0xff] %vm1836_vm0, %v1820_v63 }
 0x22b   :  { %1854 = vst.msk [vmem:[%s3299_s7 + $0x88] sm:$0xff] %vm1836_vm0, %v1821_v3  ;;  %v1703_v22 = vpop.xlane.xlu0 %1702 }
 0x22c   :  { %v1869_v5 = vadd.f32 %v2970_v38, %v1703_v22  ;;  %v1706_v16 = vpop.xlane.xlu1 %1705 }
 0x22d   :  { %v1870_v59 = vadd.f32 %v2970_v38, %v1706_v16 }
 0x22e   :  { %1902 = vst.msk [vmem:[%s3299_s7] sm:$0xff] %vm1901_vm1, %v1869_v5 }
 0x22f   :  { %v1751_v9 = vpop.xlane.xlu0 %1750 }
 0x230   :  { %v1885_v6 = vadd.f32 %v2970_v38, %v1751_v9  ;;  %v1754_v39 = vpop.xlane.xlu1 %1753 }
 0x231   :  { %v1886_v7 = vadd.f32 %v2970_v38, %v1754_v39 }
 0x232   :  { %1918 = vst.msk [vmem:[%s3299_s7 + $0x80] sm:$0xff] %vm1901_vm1, %v1885_v6 }
 0x233   :  { %1919 = vst.msk [vmem:[%s3299_s7 + $0x88] sm:$0xff] %vm1901_vm1, %v1886_v7  ;;  %v1533_v50 = vpop.xlane.xlu0 %1532 }
 0x234   :  { %v1805_v1 = vadd.f32 %v2970_v38, %v1533_v50  ;;  %v1539_v11 = vpop.xlane.xlu1 %1538 }
 0x235   :  { %v1807_v21 = vadd.f32 %v2970_v38, %v1539_v11 }
 0x236   :  { %1838 = vst.msk [vmem:[%s3299_s7 + $0x8] sm:$0xff] %vm1836_vm0, %v1805_v1 }
 0x237   :  { %1903 = vst.msk [vmem:[%s3299_s7 + $0x8] sm:$0xff] %vm1901_vm1, %v1870_v59  ;;  %v1536_v17 = vpop.xlane.xlu0 %1535 }
 0x238   :  { %1840 = vst.msk [vmem:[%s3299_s7 + $0x18] sm:$0xff] %vm1836_vm0, %v1807_v21  ;;  %v1806_v23 = vadd.f32 %v2970_v38, %v1536_v17  ;;  %v1587_v24 = vpop.xlane.xlu1 %1586 }
 0x239   :  { %v1823_v12 = vadd.f32 %v2970_v38, %v1587_v24 }
 0x23a   :  { %1839 = vst.msk [vmem:[%s3299_s7 + $0x10] sm:$0xff] %vm1836_vm0, %v1806_v23 }
 0x23b   :  { %1856 = vst.msk [vmem:[%s3299_s7 + $0x98] sm:$0xff] %vm1836_vm0, %v1823_v12  ;;  %v1584_v15 = vpop.xlane.xlu0 %1583 }
 0x23c   :  { %v1822_v30 = vadd.f32 %v2970_v38, %v1584_v15  ;;  %v1712_v42 = vpop.xlane.xlu1 %1711 }
 0x23d   :  { %v1872_v37 = vadd.f32 %v2970_v38, %v1712_v42 }
 0x23e   :  { %1855 = vst.msk [vmem:[%s3299_s7 + $0x90] sm:$0xff] %vm1836_vm0, %v1822_v30 }
 0x23f   :  { %1905 = vst.msk [vmem:[%s3299_s7 + $0x18] sm:$0xff] %vm1901_vm1, %v1872_v37  ;;  %v1709_v27 = vpop.xlane.xlu0 %1708 }
 0x240   :  { %v1871_v32 = vadd.f32 %v2970_v38, %v1709_v27  ;;  %v1760_v4 = vpop.xlane.xlu1 %1759 }
 0x241   :  { %v1888_v36 = vadd.f32 %v2970_v38, %v1760_v4 }
 0x242   :  { %1904 = vst.msk [vmem:[%s3299_s7 + $0x10] sm:$0xff] %vm1901_vm1, %v1871_v32 }
 0x243   :  { %1921 = vst.msk [vmem:[%s3299_s7 + $0x98] sm:$0xff] %vm1901_vm1, %v1888_v36  ;;  %v1757_v41 = vpop.xlane.xlu0 %1756 }
 0x244   :  { %v1887_v0 = vadd.f32 %v2970_v38, %v1757_v41  ;;  %v1545_v25 = vpop.xlane.xlu1 %1544 }
 0x245   :  { %v1809_v40 = vadd.f32 %v2970_v38, %v1545_v25 }
 0x246   :  { %1920 = vst.msk [vmem:[%s3299_s7 + $0x90] sm:$0xff] %vm1901_vm1, %v1887_v0 }
 0x247   :  { %1842 = vst.msk [vmem:[%s3299_s7 + $0x28] sm:$0xff] %vm1836_vm0, %v1809_v40  ;;  %v1542_v20 = vpop.xlane.xlu0 %1541 }
 0x248   :  { %v1808_v18 = vadd.f32 %v2970_v38, %v1542_v20  ;;  %v1593_v34 = vpop.xlane.xlu1 %1592 }
 0x249   :  { %v1825_v31 = vadd.f32 %v2970_v38, %v1593_v34 }
 0x24a   :  { %1841 = vst.msk [vmem:[%s3299_s7 + $0x20] sm:$0xff] %vm1836_vm0, %v1808_v18 }
 0x24b   :  { %1858 = vst.msk [vmem:[%s3299_s7 + $0xa8] sm:$0xff] %vm1836_vm0, %v1825_v31  ;;  %v1590_v43 = vpop.xlane.xlu0 %1589 }
 0x24c   :  { %v1824_v13 = vadd.f32 %v2970_v38, %v1590_v43  ;;  %v1718_v35 = vpop.xlane.xlu1 %1717 }
 0x24d   :  { %v1874_v14 = vadd.f32 %v2970_v38, %v1718_v35 }
 0x24e   :  { %1857 = vst.msk [vmem:[%s3299_s7 + $0xa0] sm:$0xff] %vm1836_vm0, %v1824_v13 }
 0x24f   :  { %1907 = vst.msk [vmem:[%s3299_s7 + $0x28] sm:$0xff] %vm1901_vm1, %v1874_v14  ;;  %v1715_v45 = vpop.xlane.xlu0 %1714 }
 0x250   :  { %v1873_v46 = vadd.f32 %v2970_v38, %v1715_v45  ;;  %v1766_v47 = vpop.xlane.xlu1 %1765 }
 0x251   :  { %v1890_v10 = vadd.f32 %v2970_v38, %v1766_v47 }
 0x252   :  { %1906 = vst.msk [vmem:[%s3299_s7 + $0x20] sm:$0xff] %vm1901_vm1, %v1873_v46 }
 0x253   :  { %1923 = vst.msk [vmem:[%s3299_s7 + $0xa8] sm:$0xff] %vm1901_vm1, %v1890_v10  ;;  %v1763_v48 = vpop.xlane.xlu0 %1762 }
 0x254   :  { %v1889_v44 = vadd.f32 %v2970_v38, %v1763_v48  ;;  %v1551_v51 = vpop.xlane.xlu1 %1550 }
 0x255   :  { %v1811_v53 = vadd.f32 %v2970_v38, %v1551_v51 }
 0x256   :  { %1922 = vst.msk [vmem:[%s3299_s7 + $0xa0] sm:$0xff] %vm1901_vm1, %v1889_v44 }
 0x257   :  { %1844 = vst.msk [vmem:[%s3299_s7 + $0x38] sm:$0xff] %vm1836_vm0, %v1811_v53  ;;  %v1548_v54 = vpop.xlane.xlu0 %1547 }
 0x258   :  { %v1810_v55 = vadd.f32 %v2970_v38, %v1548_v54  ;;  %v1599_v57 = vpop.xlane.xlu1 %1598 }
 0x259   :  { %v1827_v52 = vadd.f32 %v2970_v38, %v1599_v57 }
 0x25a   :  { %1843 = vst.msk [vmem:[%s3299_s7 + $0x30] sm:$0xff] %vm1836_vm0, %v1810_v55 }
 0x25b   :  { %1860 = vst.msk [vmem:[%s3299_s7 + $0xb8] sm:$0xff] %vm1836_vm0, %v1827_v52  ;;  %v1596_v26 = vpop.xlane.xlu0 %1595 }
 0x25c   :  { %v1826_v33 = vadd.f32 %v2970_v38, %v1596_v26  ;;  %v1724_v60 = vpop.xlane.xlu1 %1723 }
 0x25d   :  { %v1876_v29 = vadd.f32 %v2970_v38, %v1724_v60 }
 0x25e   :  { %1859 = vst.msk [vmem:[%s3299_s7 + $0xb0] sm:$0xff] %vm1836_vm0, %v1826_v33 }
 0x25f   :  { %1909 = vst.msk [vmem:[%s3299_s7 + $0x38] sm:$0xff] %vm1901_vm1, %v1876_v29  ;;  %v1721_v62 = vpop.xlane.xlu0 %1720 }
 0x260   :  { %v1875_v49 = vadd.f32 %v2970_v38, %v1721_v62  ;;  %v1772_v56 = vpop.xlane.xlu1 %1771 }
 0x261   :  { %v1892_v2 = vadd.f32 %v2970_v38, %v1772_v56 }
 0x262   :  { %1908 = vst.msk [vmem:[%s3299_s7 + $0x30] sm:$0xff] %vm1901_vm1, %v1875_v49 }
 0x263   :  { %1925 = vst.msk [vmem:[%s3299_s7 + $0xb8] sm:$0xff] %vm1901_vm1, %v1892_v2  ;;  %v1769_v61 = vpop.xlane.xlu0 %1768 }
 0x264   :  { %v1891_v19 = vadd.f32 %v2970_v38, %v1769_v61  ;;  %v1557_v8 = vpop.xlane.xlu1 %1556 }
 0x265   :  { %v1813_v28 = vadd.f32 %v2970_v38, %v1557_v8 }
 0x266   :  { %1924 = vst.msk [vmem:[%s3299_s7 + $0xb0] sm:$0xff] %vm1901_vm1, %v1891_v19 }
 0x267   :  { %1846 = vst.msk [vmem:[%s3299_s7 + $0x48] sm:$0xff] %vm1836_vm0, %v1813_v28  ;;  %v1554_v63 = vpop.xlane.xlu0 %1553 }
 0x268   :  { %v1812_v58 = vadd.f32 %v2970_v38, %v1554_v63  ;;  %v1605_v3 = vpop.xlane.xlu1 %1604 }
 0x269   :  { %v1829_v22 = vadd.f32 %v2970_v38, %v1605_v3 }
 0x26a   :  { %1845 = vst.msk [vmem:[%s3299_s7 + $0x40] sm:$0xff] %vm1836_vm0, %v1812_v58 }
 0x26b   :  { %1862 = vst.msk [vmem:[%s3299_s7 + $0xc8] sm:$0xff] %vm1836_vm0, %v1829_v22  ;;  %v1602_v5 = vpop.xlane.xlu0 %1601 }
 0x26c   :  { %v1828_v16 = vadd.f32 %v2970_v38, %v1602_v5  ;;  %v1730_v9 = vpop.xlane.xlu1 %1729 }
 0x26d   :  { %v1878_v6 = vadd.f32 %v2970_v38, %v1730_v9 }
 0x26e   :  { %1861 = vst.msk [vmem:[%s3299_s7 + $0xc0] sm:$0xff] %vm1836_vm0, %v1828_v16 }
 0x26f   :  { %1911 = vst.msk [vmem:[%s3299_s7 + $0x48] sm:$0xff] %vm1901_vm1, %v1878_v6  ;;  %v1727_v39 = vpop.xlane.xlu0 %1726 }
 0x270   :  { %v1877_v7 = vadd.f32 %v2970_v38, %v1727_v39  ;;  %v1778_v50 = vpop.xlane.xlu1 %1777 }
 0x271   :  { %v1894_v1 = vadd.f32 %v2970_v38, %v1778_v50 }
 0x272   :  { %1910 = vst.msk [vmem:[%s3299_s7 + $0x40] sm:$0xff] %vm1901_vm1, %v1877_v7 }
 0x273   :  { %1927 = vst.msk [vmem:[%s3299_s7 + $0xc8] sm:$0xff] %vm1901_vm1, %v1894_v1  ;;  %v1775_v11 = vpop.xlane.xlu0 %1774 }
 0x274   :  { %v1893_v59 = vadd.f32 %v2970_v38, %v1775_v11  ;;  %v1563_v21 = vpop.xlane.xlu1 %1562 }
 0x275   :  { %v1815_v17 = vadd.f32 %v2970_v38, %v1563_v21 }
 0x276   :  { %1926 = vst.msk [vmem:[%s3299_s7 + $0xc0] sm:$0xff] %vm1901_vm1, %v1893_v59 }
 0x277   :  { %1848 = vst.msk [vmem:[%s3299_s7 + $0x58] sm:$0xff] %vm1836_vm0, %v1815_v17  ;;  %v1560_v23 = vpop.xlane.xlu0 %1559 }
 0x278   :  { %v1814_v24 = vadd.f32 %v2970_v38, %v1560_v23  ;;  %v1611_v12 = vpop.xlane.xlu1 %1610 }
 0x279   :  { %v1831_v15 = vadd.f32 %v2970_v38, %v1611_v12 }
 0x27a   :  { %1847 = vst.msk [vmem:[%s3299_s7 + $0x50] sm:$0xff] %vm1836_vm0, %v1814_v24 }
 0x27b   :  { %1864 = vst.msk [vmem:[%s3299_s7 + $0xd8] sm:$0xff] %vm1836_vm0, %v1831_v15  ;;  %v1608_v30 = vpop.xlane.xlu0 %1607 }
 0x27c   :  { %v1830_v42 = vadd.f32 %v2970_v38, %v1608_v30  ;;  %v1736_v37 = vpop.xlane.xlu1 %1735 }
 0x27d   :  { %v1880_v27 = vadd.f32 %v2970_v38, %v1736_v37 }
 0x27e   :  { %1863 = vst.msk [vmem:[%s3299_s7 + $0xd0] sm:$0xff] %vm1836_vm0, %v1830_v42 }
 0x27f   :  { %1913 = vst.msk [vmem:[%s3299_s7 + $0x58] sm:$0xff] %vm1901_vm1, %v1880_v27  ;;  %v1733_v32 = vpop.xlane.xlu0 %1732 }
 0x280   :  { %v1879_v4 = vadd.f32 %v2970_v38, %v1733_v32  ;;  %v1784_v36 = vpop.xlane.xlu1 %1783 }
 0x281   :  { %v1896_v41 = vadd.f32 %v2970_v38, %v1784_v36 }
 0x282   :  { %1912 = vst.msk [vmem:[%s3299_s7 + $0x50] sm:$0xff] %vm1901_vm1, %v1879_v4 }
 0x283   :  { %1929 = vst.msk [vmem:[%s3299_s7 + $0xd8] sm:$0xff] %vm1901_vm1, %v1896_v41  ;;  %v1781_v0 = vpop.xlane.xlu0 %1780 }
 0x284   :  { %v1895_v25 = vadd.f32 %v2970_v38, %v1781_v0 }
 0x286   :  { %1928 = vst.msk [vmem:[%s3299_s7 + $0xd0] sm:$0xff] %vm1901_vm1, %v1895_v25 }
 0x287   :  { %v1566_v40 = vpop.xlane.xlu0 %1565 }
 0x288   :  { %v1816_v20 = vadd.f32 %v2970_v38, %v1566_v40 }
 0x289   :  { %v1569_v18 = vpop.xlane.xlu1 %1568 }
 0x28a   :  { %1849 = vst.msk [vmem:[%s3299_s7 + $0x60] sm:$0xff] %vm1836_vm0, %v1816_v20  ;;  %v1817_v34 = vadd.f32 %v2970_v38, %v1569_v18 }
 0x28b   :  { %v1614_v31 = vpop.xlane.xlu0 %1613 }
 0x28c   :  { %v1832_v43 = vadd.f32 %v2970_v38, %v1614_v31  ;;  %1850 = vst.msk [vmem:[%s3299_s7 + $0x68] sm:$0xff] %vm1836_vm0, %v1817_v34 }
 0x28d   :  { %v1617_v13 = vpop.xlane.xlu1 %1616 }
 0x28e   :  { %1865 = vst.msk [vmem:[%s3299_s7 + $0xe0] sm:$0xff] %vm1836_vm0, %v1832_v43  ;;  %v1833_v35 = vadd.f32 %v2970_v38, %v1617_v13 }
 0x28f   :  { %v1739_v14 = vpop.xlane.xlu0 %1738 }
 0x290   :  { %v1881_v45 = vadd.f32 %v2970_v38, %v1739_v14  ;;  %1866 = vst.msk [vmem:[%s3299_s7 + $0xe8] sm:$0xff] %vm1836_vm0, %v1833_v35 }
 0x291   :  { %v1742_v46 = vpop.xlane.xlu1 %1741 }
 0x292   :  { %1914 = vst.msk [vmem:[%s3299_s7 + $0x60] sm:$0xff] %vm1901_vm1, %v1881_v45  ;;  %v1882_v47 = vadd.f32 %v2970_v38, %v1742_v46 }
 0x293   :  { %v1787_v10 = vpop.xlane.xlu0 %1786 }
 0x294   :  { %v1897_v48 = vadd.f32 %v2970_v38, %v1787_v10  ;;  %1915 = vst.msk [vmem:[%s3299_s7 + $0x68] sm:$0xff] %vm1901_vm1, %v1882_v47 }
 0x295   :  { %v1790_v44 = vpop.xlane.xlu1 %1789 }
 0x296   :  { %1930 = vst.msk [vmem:[%s3299_s7 + $0xe0] sm:$0xff] %vm1901_vm1, %v1897_v48  ;;  %v1898_v51 = vadd.f32 %v2970_v38, %v1790_v44 }
 0x298   :  { %1931 = vst.msk [vmem:[%s3299_s7 + $0xe8] sm:$0xff] %vm1901_vm1, %v1898_v51 }
 0x29f   :  { %v1572_v53 = vpop.xlane.xlu0 %1571 }
 0x2a0   :  { %v1818_v54 = vadd.f32 %v2970_v38, %v1572_v53  ;;  %v1575_v55 = vpop.xlane.xlu1 %1574 }
 0x2a1   :  { %v1819_v57 = vadd.f32 %v2970_v38, %v1575_v55 }
 0x2a2   :  { %1851 = vst.msk [vmem:[%s3299_s7 + $0x70] sm:$0xff] %vm1836_vm0, %v1818_v54 }
 0x2a3   :  { %1852 = vst.msk [vmem:[%s3299_s7 + $0x78] sm:$0xff] %vm1836_vm0, %v1819_v57  ;;  %v1620_v52 = vpop.xlane.xlu0 %1619 }
 0x2a4   :  { %v1834_v26 = vadd.f32 %v2970_v38, %v1620_v52  ;;  %v1623_v33 = vpop.xlane.xlu1 %1622 }
 0x2a5   :  { %v1835_v60 = vadd.f32 %v2970_v38, %v1623_v33 }
 0x2a6   :  { %1867 = vst.msk [vmem:[%s3299_s7 + $0xf0] sm:$0xff] %vm1836_vm0, %v1834_v26 }
 0x2a7   :  { %1868 = vst.msk [vmem:[%s3299_s7 + $0xf8] sm:$0xff] %vm1836_vm0, %v1835_v60  ;;  %v1745_v29 = vpop.xlane.xlu0 %1744 }
 0x2a8   :  { %v1883_v62 = vadd.f32 %v2970_v38, %v1745_v29  ;;  %v1748_v49 = vpop.xlane.xlu1 %1747 }
 0x2a9   :  { %v1884_v56 = vadd.f32 %v2970_v38, %v1748_v49 }
 0x2aa   :  { %1916 = vst.msk [vmem:[%s3299_s7 + $0x70] sm:$0xff] %vm1901_vm1, %v1883_v62 }
 0x2ab   :  { %1917 = vst.msk [vmem:[%s3299_s7 + $0x78] sm:$0xff] %vm1901_vm1, %v1884_v56  ;;  %v1793_v2 = vpop.xlane.xlu0 %1792 }
 0x2ac   :  { %v1899_v61 = vadd.f32 %v2970_v38, %v1793_v2  ;;  %v1796_v19 = vpop.xlane.xlu1 %1795 }
 0x2ad   :  { %v1900_v8 = vadd.f32 %v2970_v38, %v1796_v19 }
 0x2ae   :  { %1932 = vst.msk [vmem:[%s3299_s7 + $0xf0] sm:$0xff] %vm1901_vm1, %v1899_v61 }
 0x2af   :  { %1933 = vst.msk [vmem:[%s3299_s7 + $0xf8] sm:$0xff] %vm1901_vm1, %v1900_v8 }

</bundles_post_ra>
